<compile_context>
chip_gen: v7x
topology: tpu7x:2x2x1
jax: 0.10.0
libtpu: 0.0.40
codegen_flags: <defaults>
</compile_context>

<pallas_src>
import functools

import jax
import jax.numpy as jnp
from jax import lax
from jax.experimental import pallas as pl
from jax.experimental.pallas import tpu as pltpu

EPS = 1e-5


def _round_up(x, m):
    return (x + m - 1) // m * m


def _layout(H, W):
    # Image starts at lane `off` so the conv-output window (image offset W+3)
    # begins at a 128-aligned lane -> unmasked, lane-dense window stores.
    off = (-(W + 3)) % 128
    PF = _round_up(off + (H + 2) * (W + 2) + 2, 128)  # +2: last tap slice stays in bounds
    return off, PF


def _halo_mask(H, W, off, PF):
    # 1.0 at interior pixels of the padded-flat image, 0.0 at halo / tail.
    Wp = W + 2
    p = jnp.arange(PF) - off
    r = p // Wp
    c = p % Wp
    interior = (p >= 0) & (p < (H + 2) * Wp) & (r >= 1) & (r <= H) & (c >= 1) & (c <= W)
    return interior.astype(jnp.float32).reshape(1, PF)


def _to_padded_flat(x_nchw, off, PF):
    N, C, H, W = x_nchw.shape
    xp = jnp.pad(x_nchw, ((0, 0), (0, 0), (1, 1), (1, 1)))
    xf = xp.reshape(N, C, (H + 2) * (W + 2))
    return jnp.pad(xf, ((0, 0), (0, 0), (off, PF - off - (H + 2) * (W + 2))))


def _pick_batch_block(N, Cin, Cout, PF, H, W, max_nb=8, budget=24 * 1024 * 1024):
    # Largest Nb | N whose per-step working set stays under a VMEM budget.
    L = H * (W + 2)
    best = 1
    for nb in range(1, min(N, max_nb) + 1):
        if N % nb:
            continue
        need = (2 * nb * Cin * PF * 2 + 2 * nb * Cout * PF * 2 + nb * Cin * PF * 4
                + 9 * Cin * nb * L * 6 + Cout * nb * L * 8)
        if need <= budget:
            best = nb
    return best


def _pick_cout_tile(Cout, max_t=256):
    if Cout <= max_t:
        return Cout
    for t in range(max_t, 0, -1):
        if Cout % t == 0 and t % 8 == 0:
            return t
    return Cout


def _vmem_limit_bytes(Nb, Cin, Tco, PF, H, W):
    L = H * (W + 2)
    need = (2 * Nb * Cin * PF * 2        # bf16 input block, double buffered
            + 2 * Nb * Tco * PF * 2      # bf16 output block, double buffered
            + Nb * Cin * PF * 4          # f32 upcast / fused BN+ReLU activation
            + 9 * Cin * Nb * L * 6       # im2col slab (f32 + bf16 operand)
            + Tco * Nb * L * 8           # f32 matmul result + masked copy
            + 2 * Tco * 9 * Cin * 2      # bf16 weights, double buffered
            + (2 << 20))
    # min: raise v5e's 16 MiB scoped default; max: stay under v7x's 64 MiB VMEM.
    return int(min(max(2 * need, 32 * 1024 * 1024), 64 * 1024 * 1024))


# ----------------------------------------------------------------------------
# In-kernel conv core: one im2col matmul per grid step (bf16 MXU, f32 acc).
# ----------------------------------------------------------------------------
def _conv_core(a_f32, wmat, bias, hmask, H, W, off):
    """Batched 3x3 SAME conv of Nb padded-flat images.

    a_f32: (Nb, Cin, PF) f32, zero-halo padded-flat inputs.
    wmat:  (Tco, 9*Cin) bf16, columns ordered (ky, kx, cin).
    bias:  (Tco, 1) f32.
    hmask: (1, PF) f32 interior mask.
    Returns (out, qmask): out (Tco, Nb*L) f32 conv+bias, masked to the
    interior pixels; qmask (1, Nb*L) interior mask of the output window.
    """
    Nb, Cin, PF = a_f32.shape
    Wp = W + 2
    L = H * Wp
    offs = [off + ky * Wp + kx for ky in range(3) for kx in range(3)]
    # im2col: 9 lane-shifted views per image, images stacked along lanes so a
    # single wide dot feeds the MXU.
    patches = jnp.concatenate(
        [jnp.concatenate([a_f32[n, :, o:o + L] for n in range(Nb)], axis=1)
         for o in offs], axis=0)                                   # (9Cin, Nb*L) f32
    out = jnp.dot(wmat, patches.astype(jnp.bfloat16),
                  preferred_element_type=jnp.float32)              # (Tco, Nb*L) f32
    qmask = hmask[:, off + W + 3: off + W + 3 + L]                 # (1, L)
    if Nb > 1:
        qmask = jnp.concatenate([qmask] * Nb, axis=1)              # (1, Nb*L)
    out = (out + bias) * qmask      # zeroes the wrap / halo columns
    return out, qmask


def _finish(out, qmask, y_ref, sum_ref, ssd_ref, H, W, off):
    """f32 per-block BN partials + lane-dense bf16 store of the conv output."""
    Nb = y_ref.shape[0]
    PF = y_ref.shape[-1]
    Tco, NbL = out.shape
    L = H * (W + 2)
    OW = off + W + 3                    # 128-aligned window start
    n_pix = Nb * H * W
    # Shifted one-pass per-block stats (sum + sum of squared deviations from
    # the block mean); combined across blocks with Chan's formula outside.
    s = jnp.sum(out, axis=1, keepdims=True)                        # (Tco, 1)
    d = (out - s * (1.0 / float(n_pix))) * qmask
    ssd = jnp.sum(d * d, axis=1, keepdims=True)
    sum_ref[...] = s[None]
    ssd_ref[...] = ssd[None]
    # Zero-halo padded-flat output: two small halo zero-fills + a direct,
    # lane-aligned window store per image (no full-tile re-embed copy).
    dt = y_ref.dtype
    y_ref[:, :, 0:OW] = jnp.zeros((Nb, Tco, OW), dt)
    y_ref[:, :, OW + L:PF] = jnp.zeros((Nb, Tco, PF - OW - L), dt)
    for n in range(Nb):
        y_ref[n, :, OW:OW + L] = out[:, n * L:(n + 1) * L].astype(dt)


# ----------------------------------------------------------------------------
# Kernels
# ----------------------------------------------------------------------------
def _conv_stats_kernel(x_ref, w_ref, b_ref, hmask_ref,
                       y_ref, sum_ref, ssd_ref, *, H, W, off):
    a = x_ref[...].astype(jnp.float32)          # raw input is already zero-halo
    out, qmask = _conv_core(a, w_ref[...], b_ref[...], hmask_ref[...], H, W, off)
    _finish(out, qmask, y_ref, sum_ref, ssd_ref, H, W, off)


def _bnrelu_conv_stats_kernel(x_ref, scale_ref, shift_ref, w_ref, b_ref,
                              hmask_ref, y_ref, sum_ref, ssd_ref, *, H, W, off):
    # Previous layer's BN+ReLU fused onto this conv's input tile; the halo
    # mask restores exact zeros in the padding ring (relu(shift) may be != 0).
    x = x_ref[...].astype(jnp.float32)
    a = jnp.maximum(x * scale_ref[...] + shift_ref[...], 0.0) * hmask_ref[...]
    out, qmask = _conv_core(a, w_ref[...], b_ref[...], hmask_ref[...], H, W, off)
    _finish(out, qmask, y_ref, sum_ref, ssd_ref, H, W, off)


def _bnrelu_kernel(x_ref, scale_ref, shift_ref, o_ref):
    # Final BN+ReLU: purely elementwise, lane-dense on the full PF tile.
    # Valid-pixel extraction happens in the XLA wrapper (no in-kernel shuffles).
    a = x_ref[...].astype(jnp.float32) * scale_ref[...] + shift_ref[...]
    o_ref[...] = jnp.maximum(a, 0.0)


# ----------------------------------------------------------------------------
# pallas_call wrappers
# ----------------------------------------------------------------------------
def _conv_call(x_pf, wmat, bias, hmask, H, W, off, Nb, Tco, scale=None, shift=None):
    N, Cin, PF = x_pf.shape
    Cout = wmat.shape[0]
    gN, gC = N // Nb, Cout // Tco
    fused = scale is not None

    if fused:
        kernel = functools.partial(_bnrelu_conv_stats_kernel, H=H, W=W, off=off)
        inputs = (x_pf, scale, shift, wmat, bias, hmask)
        in_specs = [
            pl.BlockSpec((Nb, Cin, PF), lambda n, c: (n, 0, 0)),
            pl.BlockSpec((Cin, 1), lambda n, c: (0, 0)),
            pl.BlockSpec((Cin, 1), lambda n, c: (0, 0)),
            pl.BlockSpec((Tco, 9 * Cin), lambda n, c: (c, 0)),
            pl.BlockSpec((Tco, 1), lambda n, c: (c, 0)),
            pl.BlockSpec((1, PF), lambda n, c: (0, 0)),
        ]
    else:
        kernel = functools.partial(_conv_stats_kernel, H=H, W=W, off=off)
        inputs = (x_pf, wmat, bias, hmask)
        in_specs = [
            pl.BlockSpec((Nb, Cin, PF), lambda n, c: (n, 0, 0)),
            pl.BlockSpec((Tco, 9 * Cin), lambda n, c: (c, 0)),
            pl.BlockSpec((Tco, 1), lambda n, c: (c, 0)),
            pl.BlockSpec((1, PF), lambda n, c: (0, 0)),
        ]

    return pl.pallas_call(
        kernel,
        out_shape=(
            jax.ShapeDtypeStruct((N, Cout, PF), jnp.bfloat16),  # padded-flat conv (bf16)
            jax.ShapeDtypeStruct((gN, Cout, 1), jnp.float32),   # per-block sum
            jax.ShapeDtypeStruct((gN, Cout, 1), jnp.float32),   # per-block sum sq dev
        ),
        grid_spec=pltpu.PrefetchScalarGridSpec(
            num_scalar_prefetch=0,
            grid=(gN, gC),
            in_specs=in_specs,
            out_specs=[
                pl.BlockSpec((Nb, Tco, PF), lambda n, c: (n, c, 0)),
                pl.BlockSpec((1, Tco, 1), lambda n, c: (n, c, 0)),
                pl.BlockSpec((1, Tco, 1), lambda n, c: (n, c, 0)),
            ],
        ),
        compiler_params=pltpu.CompilerParams(
            dimension_semantics=("parallel", "parallel"),
            vmem_limit_bytes=_vmem_limit_bytes(Nb, Cin, Tco, PF, H, W)),
    )(*inputs)


def _bnrelu_call(y_pf, scale, shift, Nb):
    N, C, PF = y_pf.shape
    return pl.pallas_call(
        _bnrelu_kernel,
        out_shape=jax.ShapeDtypeStruct((N, C, PF), jnp.float32),
        grid_spec=pltpu.PrefetchScalarGridSpec(
            num_scalar_prefetch=0,
            grid=(N // Nb,),
            in_specs=[
                pl.BlockSpec((Nb, C, PF), lambda n: (n, 0, 0)),
                pl.BlockSpec((C, 1), lambda n: (0, 0)),
                pl.BlockSpec((C, 1), lambda n: (0, 0)),
            ],
            out_specs=pl.BlockSpec((Nb, C, PF), lambda n: (n, 0, 0)),
        ),
        compiler_params=pltpu.CompilerParams(
            dimension_semantics=("parallel",)),
    )(y_pf, scale, shift)


def _bn_coeffs(psum, pssd, gamma, beta, n_per_block, total_count):
    # Chan's parallel combination of per-block (sum, sum-sq-dev) partials.
    s = psum[:, :, 0]                                     # (gN, C)
    ssd = pssd[:, :, 0]
    m_b = s / n_per_block
    mean = jnp.sum(s, axis=0) / total_count               # (C,)
    m2 = jnp.sum(ssd + n_per_block * (m_b - mean[None, :]) ** 2, axis=0)
    var = jnp.maximum(m2 / total_count, 0.0)              # biased, as in BN training
    scale = gamma.astype(jnp.float32) / jnp.sqrt(var + EPS)
    shift = beta.astype(jnp.float32) - mean * scale
    return scale.reshape(-1, 1), shift.reshape(-1, 1)


# ----------------------------------------------------------------------------
# ConvBlock forward (NCHW in / NCHW out, like the PyTorch module)
# ----------------------------------------------------------------------------
def conv_block_forward(x_nchw, params):
    x = x_nchw.astype(jnp.float32)
    N, Cin, H, W = x.shape
    Cout = params["w1"].shape[0]
    off, PF = _layout(H, W)
    count = float(N * H * W)

    Nb = _pick_batch_block(N, Cin, Cout, PF, H, W)
    Tco = _pick_cout_tile(Cout)

    hmask = _halo_mask(H, W, off, PF)
    # PyTorch OIHW -> (Cout, 9*Cin) with columns ordered (ky, kx, cin); bf16 MXU operands.
    w1m = jnp.transpose(params["w1"], (0, 2, 3, 1)).reshape(Cout, 9 * Cin).astype(jnp.bfloat16)
    w2m = jnp.transpose(params["w2"], (0, 2, 3, 1)).reshape(Cout, 9 * Cout).astype(jnp.bfloat16)
    b1 = params["b1"].reshape(Cout, 1).astype(jnp.float32)
    b2 = params["b2"].reshape(Cout, 1).astype(jnp.float32)

    # The ONLY padding in the forward (the raw network input); conv outputs
    # are produced directly in zero-halo padded-flat layout for the next conv.
    x_pf = _to_padded_flat(x, off, PF).astype(jnp.bfloat16)

    y1_pf, s1, ssd1 = _conv_call(x_pf, w1m, b1, hmask, H, W, off, Nb, Tco)
    sc1, sh1 = _bn_coeffs(s1, ssd1, params["gamma1"], params["beta1"],
                          float(Nb * H * W), count)

    y2_pf, s2, ssd2 = _conv_call(y1_pf, w2m, b2, hmask, H, W, off, Nb, Tco,
                                 scale=sc1, shift=sh1)
    sc2, sh2 = _bn_coeffs(s2, ssd2, params["gamma2"], params["beta2"],
                          float(Nb * H * W), count)

    y_full = _bnrelu_call(y2_pf, sc2, sh2, Nb)             # (N, Cout, PF) f32, lane-dense
    y_img = y_full[:, :, off:off + (H + 2) * (W + 2)].reshape(N, Cout, H + 2, W + 2)
    return y_img[:, :, 1:H + 1, 1:W + 1]                   # XLA slicing, fused & cheap


# ----------------------------------------------------------------------------
# References (for correctness checking only)
# ----------------------------------------------------------------------------
def reference_forward(x_nchw, params):
    # Pure f32, PyTorch training-mode semantics.
    def conv(x, w, b):
        y = lax.conv_general_dilated(
            x, w, window_strides=(1, 1), padding=((1, 1), (1, 1)),
            dimension_numbers=("NCHW", "OIHW", "NCHW"))
        return y + b.reshape(1, -1, 1, 1)

    def bnr(x, gamma, beta):
        mean = x.mean(axis=(0, 2, 3), keepdims=True)
        var = x.var(axis=(0, 2, 3), keepdims=True)
        y = (x - mean) / jnp.sqrt(var + EPS)
        y = y * gamma.reshape(1, -1, 1, 1) + beta.reshape(1, -1, 1, 1)
        return jnp.maximum(y, 0.0)

    x = bnr(conv(x_nchw, params["w1"], params["b1"]), params["gamma1"], params["beta1"])
    x = bnr(conv(x, params["w2"], params["b2"]), params["gamma2"], params["beta2"])
    return x


def reference_forward_bf16(x_nchw, params):
    # Mirrors the kernel's quantization points (bf16 MXU operands, bf16
    # inter-layer activations, f32 accumulation and BN statistics).
    def conv(xv, w, b):
        y = lax.conv_general_dilated(
            xv.astype(jnp.bfloat16), w.astype(jnp.bfloat16),
            window_strides=(1, 1), padding=((1, 1), (1, 1)),
            dimension_numbers=("NCHW", "OIHW", "NCHW"),
            preferred_element_type=jnp.float32)
        return y + b.reshape(1, -1, 1, 1)

    def bn_coeffs(y, gamma, beta):
        mean = y.mean(axis=(0, 2, 3))
        var = y.var(axis=(0, 2, 3))
        scale = gamma / jnp.sqrt(var + EPS)
        shift = beta - mean * scale
        return scale.reshape(1, -1, 1, 1), shift.reshape(1, -1, 1, 1)

    y1 = conv(x_nchw, params["w1"], params["b1"])
    sc1, sh1 = bn_coeffs(y1, params["gamma1"], params["beta1"])
    a1 = jnp.maximum(y1.astype(jnp.bfloat16).astype(jnp.float32) * sc1 + sh1, 0.0)
    y2 = conv(a1, params["w2"], params["b2"])
    sc2, sh2 = bn_coeffs(y2, params["gamma2"], params["beta2"])
    return jnp.maximum(y2.astype(jnp.bfloat16).astype(jnp.float32) * sc2 + sh2, 0.0)


if __name__ == "__main__":
    key = jax.random.PRNGKey(0)
    N, Cin, Cout, H, W = 2, 4, 8, 16, 16

    ks = jax.random.split(key, 7)
    x = jax.random.normal(ks[0], (N, Cin, H, W), dtype=jnp.float32)

    # Parameters in PyTorch layouts (conv weights OIHW), synthetic init.
    params = {
        "w1": jax.random.normal(ks[1], (Cout, Cin, 3, 3), jnp.float32) * 0.1,
        "b1": jax.random.normal(ks[2], (Cout,), jnp.float32) * 0.1,
        "gamma1": 1.0 + 0.1 * jax.random.normal(ks[3], (Cout,), jnp.float32),
        "beta1": 0.1 * jax.random.normal(ks[4], (Cout,), jnp.float32),
        "w2": jax.random.normal(ks[5], (Cout, Cout, 3, 3), jnp.float32) * 0.1,
        "b2": jax.random.normal(ks[6], (Cout,), jnp.float32) * 0.1,
        "gamma2": jnp.ones((Cout,), jnp.float32),
        "beta2": jnp.zeros((Cout,), jnp.float32),
    }

    fwd = jax.jit(conv_block_forward)
    out = jax.block_until_ready(fwd(x, params))
    assert out.shape == (N, Cout, H, W), out.shape

    ref_bf16 = jax.block_until_ready(reference_forward_bf16(x, params))
    ref_f32 = jax.block_until_ready(reference_forward(x, params))
    err_bf16 = float(jnp.max(jnp.abs(out - ref_bf16)))
    err_f32 = float(jnp.max(jnp.abs(out - ref_f32)))

    # Tight check against a reference that mirrors the kernel's bf16
    # quantization points; loose (bf16-aware) check against the pure-f32
    # PyTorch-semantics reference.
    assert jnp.allclose(out, ref_bf16, rtol=2e-3, atol=2e-3), (err_bf16, err_f32)
    assert jnp.allclose(out, ref_f32, rtol=1e-1, atol=1e-1), (err_bf16, err_f32)

    print("KERNEL_OK")
</pallas_src>

<mosaic_0001>
module attributes {stable_mosaic.version = 11 : i64} {
  func.func @_conv_stats_kernel(%arg0: i32, %arg1: i32, %arg2: memref<2x4x512xbf16, #tpu.memory_space<vmem>>, %arg3: memref<8x36xbf16, #tpu.memory_space<vmem>>, %arg4: memref<8x1xf32, #tpu.memory_space<vmem>>, %arg5: memref<1x512xf32, #tpu.memory_space<vmem>>, %arg6: memref<2x8x512xbf16, #tpu.memory_space<vmem>>, %arg7: memref<1x8x1xf32, #tpu.memory_space<vmem>>, %arg8: memref<1x8x1xf32, #tpu.memory_space<vmem>>) attributes {dimension_semantics = [#tpu.dimension_semantics<parallel>, #tpu.dimension_semantics<parallel>], iteration_bounds = array<i64: 1, 1>, scalar_prefetch = 0 : i64, scratch_operands = 0 : i64, tpu.core_type = #tpu.core_type<tc>, window_params = [{transform_indices = @transform_0, window_bounds = array<i64: 2, 4, 512>}, {transform_indices = @transform_1, window_bounds = array<i64: 8, 36>}, {transform_indices = @transform_2, window_bounds = array<i64: 8, 1>}, {pipeline_mode = #tpu.pipeline_mode<synchronous>, transform_indices = @transform_3, window_bounds = array<i64: 1, 512>}, {transform_indices = @transform_4, window_bounds = array<i64: 2, 8, 512>}, {transform_indices = @transform_5, window_bounds = array<i64: 1, 8, 1>}, {transform_indices = @transform_6, window_bounds = array<i64: 1, 8, 1>}]} {
    %c0 = arith.constant 0 : index
    %c0_0 = arith.constant 0 : index
    %c0_1 = arith.constant 0 : index
    %0 = vector.load %arg2[%c0, %c0_0, %c0_1] : memref<2x4x512xbf16, #tpu.memory_space<vmem>>, vector<2x4x512xbf16>
    %1 = arith.extf %0 : vector<2x4x512xbf16> to vector<2x4x512xf32>
    %c0_2 = arith.constant 0 : index
    %c0_3 = arith.constant 0 : index
    %2 = vector.load %arg3[%c0_2, %c0_3] : memref<8x36xbf16, #tpu.memory_space<vmem>>, vector<8x36xbf16>
    %c0_4 = arith.constant 0 : index
    %c0_5 = arith.constant 0 : index
    %3 = vector.load %arg4[%c0_4, %c0_5] : memref<8x1xf32, #tpu.memory_space<vmem>>, vector<8x1xf32>
    %c0_6 = arith.constant 0 : index
    %c0_7 = arith.constant 0 : index
    %4 = vector.load %arg5[%c0_6, %c0_7] : memref<1x512xf32, #tpu.memory_space<vmem>>, vector<1x512xf32>
    %5 = vector.extract_strided_slice %1 {offsets = [0, 0, 109], sizes = [1, 4, 288], strides = [1, 1, 1]} : vector<2x4x512xf32> to vector<1x4x288xf32>
    %6 = vector.shape_cast %5 : vector<1x4x288xf32> to vector<4x288xf32>
    %7 = vector.extract_strided_slice %1 {offsets = [1, 0, 109], sizes = [1, 4, 288], strides = [1, 1, 1]} : vector<2x4x512xf32> to vector<1x4x288xf32>
    %8 = vector.shape_cast %7 : vector<1x4x288xf32> to vector<4x288xf32>
    %9 = tpu.concatenate %6, %8 in 1 : vector<4x288xf32>, vector<4x288xf32> -> vector<4x576xf32>
    %10 = vector.extract_strided_slice %1 {offsets = [0, 0, 110], sizes = [1, 4, 288], strides = [1, 1, 1]} : vector<2x4x512xf32> to vector<1x4x288xf32>
    %11 = vector.shape_cast %10 : vector<1x4x288xf32> to vector<4x288xf32>
    %12 = vector.extract_strided_slice %1 {offsets = [1, 0, 110], sizes = [1, 4, 288], strides = [1, 1, 1]} : vector<2x4x512xf32> to vector<1x4x288xf32>
    %13 = vector.shape_cast %12 : vector<1x4x288xf32> to vector<4x288xf32>
    %14 = tpu.concatenate %11, %13 in 1 : vector<4x288xf32>, vector<4x288xf32> -> vector<4x576xf32>
    %15 = vector.extract_strided_slice %1 {offsets = [0, 0, 111], sizes = [1, 4, 288], strides = [1, 1, 1]} : vector<2x4x512xf32> to vector<1x4x288xf32>
    %16 = vector.shape_cast %15 : vector<1x4x288xf32> to vector<4x288xf32>
    %17 = vector.extract_strided_slice %1 {offsets = [1, 0, 111], sizes = [1, 4, 288], strides = [1, 1, 1]} : vector<2x4x512xf32> to vector<1x4x288xf32>
    %18 = vector.shape_cast %17 : vector<1x4x288xf32> to vector<4x288xf32>
    %19 = tpu.concatenate %16, %18 in 1 : vector<4x288xf32>, vector<4x288xf32> -> vector<4x576xf32>
    %20 = vector.extract_strided_slice %1 {offsets = [0, 0, 127], sizes = [1, 4, 288], strides = [1, 1, 1]} : vector<2x4x512xf32> to vector<1x4x288xf32>
    %21 = vector.shape_cast %20 : vector<1x4x288xf32> to vector<4x288xf32>
    %22 = vector.extract_strided_slice %1 {offsets = [1, 0, 127], sizes = [1, 4, 288], strides = [1, 1, 1]} : vector<2x4x512xf32> to vector<1x4x288xf32>
    %23 = vector.shape_cast %22 : vector<1x4x288xf32> to vector<4x288xf32>
    %24 = tpu.concatenate %21, %23 in 1 : vector<4x288xf32>, vector<4x288xf32> -> vector<4x576xf32>
    %25 = vector.extract_strided_slice %1 {offsets = [0, 0, 128], sizes = [1, 4, 288], strides = [1, 1, 1]} : vector<2x4x512xf32> to vector<1x4x288xf32>
    %26 = vector.shape_cast %25 : vector<1x4x288xf32> to vector<4x288xf32>
    %27 = vector.extract_strided_slice %1 {offsets = [1, 0, 128], sizes = [1, 4, 288], strides = [1, 1, 1]} : vector<2x4x512xf32> to vector<1x4x288xf32>
    %28 = vector.shape_cast %27 : vector<1x4x288xf32> to vector<4x288xf32>
    %29 = tpu.concatenate %26, %28 in 1 : vector<4x288xf32>, vector<4x288xf32> -> vector<4x576xf32>
    %30 = vector.extract_strided_slice %1 {offsets = [0, 0, 129], sizes = [1, 4, 288], strides = [1, 1, 1]} : vector<2x4x512xf32> to vector<1x4x288xf32>
    %31 = vector.shape_cast %30 : vector<1x4x288xf32> to vector<4x288xf32>
    %32 = vector.extract_strided_slice %1 {offsets = [1, 0, 129], sizes = [1, 4, 288], strides = [1, 1, 1]} : vector<2x4x512xf32> to vector<1x4x288xf32>
    %33 = vector.shape_cast %32 : vector<1x4x288xf32> to vector<4x288xf32>
    %34 = tpu.concatenate %31, %33 in 1 : vector<4x288xf32>, vector<4x288xf32> -> vector<4x576xf32>
    %35 = vector.extract_strided_slice %1 {offsets = [0, 0, 145], sizes = [1, 4, 288], strides = [1, 1, 1]} : vector<2x4x512xf32> to vector<1x4x288xf32>
    %36 = vector.shape_cast %35 : vector<1x4x288xf32> to vector<4x288xf32>
    %37 = vector.extract_strided_slice %1 {offsets = [1, 0, 145], sizes = [1, 4, 288], strides = [1, 1, 1]} : vector<2x4x512xf32> to vector<1x4x288xf32>
    %38 = vector.shape_cast %37 : vector<1x4x288xf32> to vector<4x288xf32>
    %39 = tpu.concatenate %36, %38 in 1 : vector<4x288xf32>, vector<4x288xf32> -> vector<4x576xf32>
    %40 = vector.extract_strided_slice %1 {offsets = [0, 0, 146], sizes = [1, 4, 288], strides = [1, 1, 1]} : vector<2x4x512xf32> to vector<1x4x288xf32>
    %41 = vector.shape_cast %40 : vector<1x4x288xf32> to vector<4x288xf32>
    %42 = vector.extract_strided_slice %1 {offsets = [1, 0, 146], sizes = [1, 4, 288], strides = [1, 1, 1]} : vector<2x4x512xf32> to vector<1x4x288xf32>
    %43 = vector.shape_cast %42 : vector<1x4x288xf32> to vector<4x288xf32>
    %44 = tpu.concatenate %41, %43 in 1 : vector<4x288xf32>, vector<4x288xf32> -> vector<4x576xf32>
    %45 = vector.extract_strided_slice %1 {offsets = [0, 0, 147], sizes = [1, 4, 288], strides = [1, 1, 1]} : vector<2x4x512xf32> to vector<1x4x288xf32>
    %46 = vector.shape_cast %45 : vector<1x4x288xf32> to vector<4x288xf32>
    %47 = vector.extract_strided_slice %1 {offsets = [1, 0, 147], sizes = [1, 4, 288], strides = [1, 1, 1]} : vector<2x4x512xf32> to vector<1x4x288xf32>
    %48 = vector.shape_cast %47 : vector<1x4x288xf32> to vector<4x288xf32>
    %49 = tpu.concatenate %46, %48 in 1 : vector<4x288xf32>, vector<4x288xf32> -> vector<4x576xf32>
    %50 = tpu.concatenate %9, %14, %19, %24, %29, %34, %39, %44, %49 in 0 : vector<4x576xf32>, vector<4x576xf32>, vector<4x576xf32>, vector<4x576xf32>, vector<4x576xf32>, vector<4x576xf32>, vector<4x576xf32>, vector<4x576xf32>, vector<4x576xf32> -> vector<36x576xf32>
    %51 = arith.truncf %50 : vector<36x576xf32> to vector<36x576xbf16>
    %cst = arith.constant dense<0.000000e+00> : vector<8x576xf32>
    %52 = tpu.matmul %2, %51, %cst {dimension_numbers = #tpu.dot_dimension_numbers<[1], [0], [0], [1], [0, 0, 1, 1], [], []>} : vector<8x36xbf16>, vector<36x576xbf16>, vector<8x576xf32> -> vector<8x576xf32>
    %53 = vector.extract_strided_slice %4 {offsets = [0, 128], sizes = [1, 288], strides = [1, 1]} : vector<1x512xf32> to vector<1x288xf32>
    %54 = tpu.concatenate %53, %53 in 1 : vector<1x288xf32>, vector<1x288xf32> -> vector<1x576xf32>
    %55 = vector.broadcast %3 : vector<8x1xf32> to vector<8x576xf32>
    %56 = arith.addf %52, %55 : vector<8x576xf32>
    %57 = vector.broadcast %54 : vector<1x576xf32> to vector<8x576xf32>
    %58 = arith.mulf %56, %57 : vector<8x576xf32>
    %cst_8 = arith.constant dense<0.000000e+00> : vector<8xf32>
    %59 = vector.multi_reduction <add>, %58, %cst_8 [1] : vector<8x576xf32> to vector<8xf32>
    %60 = vector.shape_cast %59 : vector<8xf32> to vector<8x1xf32>
    %cst_9 = arith.constant 0.001953125 : f32
    %61 = vector.broadcast %cst_9 : f32 to vector<8x1xf32>
    %62 = arith.mulf %60, %61 : vector<8x1xf32>
    %63 = vector.broadcast %62 : vector<8x1xf32> to vector<8x576xf32>
    %64 = arith.subf %58, %63 : vector<8x576xf32>
    %65 = vector.broadcast %54 : vector<1x576xf32> to vector<8x576xf32>
    %66 = arith.mulf %64, %65 : vector<8x576xf32>
    %67 = arith.mulf %66, %66 : vector<8x576xf32>
    %cst_10 = arith.constant dense<0.000000e+00> : vector<8xf32>
    %68 = vector.multi_reduction <add>, %67, %cst_10 [1] : vector<8x576xf32> to vector<8xf32>
    %69 = vector.shape_cast %68 : vector<8xf32> to vector<8x1xf32>
    %70 = vector.shape_cast %60 : vector<8x1xf32> to vector<1x8x1xf32>
    %c0_11 = arith.constant 0 : index
    %c0_12 = arith.constant 0 : index
    %c0_13 = arith.constant 0 : index
    %71 = vector.load %arg7[%c0_11, %c0_12, %c0_13] : memref<1x8x1xf32, #tpu.memory_space<vmem>>, vector<1x8x1xf32>
    tpu.vector_store %arg7[%c0_11, %c0_12, %c0_13], %70 {strides = array<i32>} : memref<1x8x1xf32, #tpu.memory_space<vmem>>, vector<1x8x1xf32>,
    %72 = vector.shape_cast %69 : vector<8x1xf32> to vector<1x8x1xf32>
    %c0_14 = arith.constant 0 : index
    %c0_15 = arith.constant 0 : index
    %c0_16 = arith.constant 0 : index
    %73 = vector.load %arg8[%c0_14, %c0_15, %c0_16] : memref<1x8x1xf32, #tpu.memory_space<vmem>>, vector<1x8x1xf32>
    tpu.vector_store %arg8[%c0_14, %c0_15, %c0_16], %72 {strides = array<i32>} : memref<1x8x1xf32, #tpu.memory_space<vmem>>, vector<1x8x1xf32>,
    %cst_17 = arith.constant 0.000000e+00 : bf16
    %74 = vector.broadcast %cst_17 : bf16 to vector<2x8x128xbf16>
    %c0_18 = arith.constant 0 : index
    %c0_19 = arith.constant 0 : index
    %c0_20 = arith.constant 0 : index
    %75 = vector.load %arg6[%c0_18, %c0_19, %c0_20] : memref<2x8x512xbf16, #tpu.memory_space<vmem>>, vector<2x8x128xbf16>
    tpu.vector_store %arg6[%c0_18, %c0_19, %c0_20], %74 {strides = array<i32>} : memref<2x8x512xbf16, #tpu.memory_space<vmem>>, vector<2x8x128xbf16>,
    %cst_21 = arith.constant 0.000000e+00 : bf16
    %76 = vector.broadcast %cst_21 : bf16 to vector<2x8x96xbf16>
    %c0_22 = arith.constant 0 : index
    %c0_23 = arith.constant 0 : index
    %c416 = arith.constant 416 : index
    %77 = vector.load %arg6[%c0_22, %c0_23, %c416] : memref<2x8x512xbf16, #tpu.memory_space<vmem>>, vector<2x8x96xbf16>
    tpu.vector_store %arg6[%c0_22, %c0_23, %c416], %76 {strides = array<i32>} : memref<2x8x512xbf16, #tpu.memory_space<vmem>>, vector<2x8x96xbf16>,
    %78 = vector.extract_strided_slice %58 {offsets = [0, 0], sizes = [8, 288], strides = [1, 1]} : vector<8x576xf32> to vector<8x288xf32>
    %79 = arith.truncf %78 : vector<8x288xf32> to vector<8x288xbf16>
    %c0_24 = arith.constant 0 : index
    %c0_25 = arith.constant 0 : index
    %c128 = arith.constant 128 : index
    %80 = vector.load %arg6[%c0_24, %c0_25, %c128] : memref<2x8x512xbf16, #tpu.memory_space<vmem>>, vector<1x8x288xbf16>
    %81 = vector.shape_cast %80 : vector<1x8x288xbf16> to vector<8x288xbf16>
    %82 = vector.shape_cast %79 : vector<8x288xbf16> to vector<1x8x288xbf16>
    tpu.vector_store %arg6[%c0_24, %c0_25, %c128], %82 {strides = array<i32>} : memref<2x8x512xbf16, #tpu.memory_space<vmem>>, vector<1x8x288xbf16>,
    %83 = vector.extract_strided_slice %58 {offsets = [0, 288], sizes = [8, 288], strides = [1, 1]} : vector<8x576xf32> to vector<8x288xf32>
    %84 = arith.truncf %83 : vector<8x288xf32> to vector<8x288xbf16>
    %c1 = arith.constant 1 : index
    %c0_26 = arith.constant 0 : index
    %c128_27 = arith.constant 128 : index
    %85 = vector.load %arg6[%c1, %c0_26, %c128_27] : memref<2x8x512xbf16, #tpu.memory_space<vmem>>, vector<1x8x288xbf16>
    %86 = vector.shape_cast %85 : vector<1x8x288xbf16> to vector<8x288xbf16>
    %87 = vector.shape_cast %84 : vector<8x288xbf16> to vector<1x8x288xbf16>
    tpu.vector_store %arg6[%c1, %c0_26, %c128_27], %87 {strides = array<i32>} : memref<2x8x512xbf16, #tpu.memory_space<vmem>>, vector<1x8x288xbf16>,
    return
  }
  func.func @transform_0(%arg0: i32, %arg1: i32) -> (i32, i32, i32) {
    %c0_i32 = arith.constant 0 : i32
    %c0_i32_0 = arith.constant 0 : i32
    %c0_i32_1 = arith.constant 0 : i32
    return %arg0, %c0_i32, %c0_i32_0 : i32, i32, i32
  }
  func.func @transform_1(%arg0: i32, %arg1: i32) -> (i32, i32) {
    %c0_i32 = arith.constant 0 : i32
    %c0_i32_0 = arith.constant 0 : i32
    return %arg1, %c0_i32 : i32, i32
  }
  func.func @transform_2(%arg0: i32, %arg1: i32) -> (i32, i32) {
    %c0_i32 = arith.constant 0 : i32
    %c0_i32_0 = arith.constant 0 : i32
    return %arg1, %c0_i32 : i32, i32
  }
  func.func @transform_3(%arg0: i32, %arg1: i32) -> (i32, i32) {
    %c0_i32 = arith.constant 0 : i32
    %c0_i32_0 = arith.constant 0 : i32
    %c0_i32_1 = arith.constant 0 : i32
    return %c0_i32, %c0_i32_0 : i32, i32
  }
  func.func @transform_4(%arg0: i32, %arg1: i32) -> (i32, i32, i32) {
    %c0_i32 = arith.constant 0 : i32
    %c0_i32_0 = arith.constant 0 : i32
    return %arg0, %arg1, %c0_i32 : i32, i32, i32
  }
  func.func @transform_5(%arg0: i32, %arg1: i32) -> (i32, i32, i32) {
    %c0_i32 = arith.constant 0 : i32
    %c0_i32_0 = arith.constant 0 : i32
    return %arg0, %arg1, %c0_i32 : i32, i32, i32
  }
  func.func @transform_6(%arg0: i32, %arg1: i32) -> (i32, i32, i32) {
    %c0_i32 = arith.constant 0 : i32
    %c0_i32_0 = arith.constant 0 : i32
    return %arg0, %arg1, %c0_i32 : i32, i32, i32
  }
}

module attributes {stable_mosaic.version = 11 : i64} {
  func.func @_bnrelu_kernel(%arg0: i32, %arg1: memref<2x8x512xbf16, #tpu.memory_space<vmem>>, %arg2: memref<8x1xf32, #tpu.memory_space<vmem>>, %arg3: memref<8x1xf32, #tpu.memory_space<vmem>>, %arg4: memref<2x8x512xf32, #tpu.memory_space<vmem>>) attributes {dimension_semantics = [#tpu.dimension_semantics<parallel>], iteration_bounds = array<i64: 1>, scalar_prefetch = 0 : i64, scratch_operands = 0 : i64, tpu.core_type = #tpu.core_type<tc>, window_params = [{transform_indices = @transform_0, window_bounds = array<i64: 2, 8, 512>}, {pipeline_mode = #tpu.pipeline_mode<synchronous>, transform_indices = @transform_1, window_bounds = array<i64: 8, 1>}, {pipeline_mode = #tpu.pipeline_mode<synchronous>, transform_indices = @transform_2, window_bounds = array<i64: 8, 1>}, {transform_indices = @transform_3, window_bounds = array<i64: 2, 8, 512>}]} {
    %c0 = arith.constant 0 : index
    %c0_0 = arith.constant 0 : index
    %c0_1 = arith.constant 0 : index
    %0 = vector.load %arg1[%c0, %c0_0, %c0_1] : memref<2x8x512xbf16, #tpu.memory_space<vmem>>, vector<2x8x512xbf16>
    %1 = arith.extf %0 : vector<2x8x512xbf16> to vector<2x8x512xf32>
    %c0_2 = arith.constant 0 : index
    %c0_3 = arith.constant 0 : index
    %2 = vector.load %arg2[%c0_2, %c0_3] : memref<8x1xf32, #tpu.memory_space<vmem>>, vector<8x1xf32>
    %3 = vector.shape_cast %2 : vector<8x1xf32> to vector<1x8x1xf32>
    %4 = vector.broadcast %3 : vector<1x8x1xf32> to vector<2x8x512xf32>
    %5 = arith.mulf %1, %4 : vector<2x8x512xf32>
    %c0_4 = arith.constant 0 : index
    %c0_5 = arith.constant 0 : index
    %6 = vector.load %arg3[%c0_4, %c0_5] : memref<8x1xf32, #tpu.memory_space<vmem>>, vector<8x1xf32>
    %7 = vector.shape_cast %6 : vector<8x1xf32> to vector<1x8x1xf32>
    %8 = vector.broadcast %7 : vector<1x8x1xf32> to vector<2x8x512xf32>
    %9 = arith.addf %5, %8 : vector<2x8x512xf32>
    %cst = arith.constant 0.000000e+00 : f32
    %10 = vector.broadcast %cst : f32 to vector<2x8x512xf32>
    %11 = arith.maximumf %9, %10 : vector<2x8x512xf32>
    %c0_6 = arith.constant 0 : index
    %c0_7 = arith.constant 0 : index
    %c0_8 = arith.constant 0 : index
    %12 = vector.load %arg4[%c0_6, %c0_7, %c0_8] : memref<2x8x512xf32, #tpu.memory_space<vmem>>, vector<2x8x512xf32>
    tpu.vector_store %arg4[%c0_6, %c0_7, %c0_8], %11 {strides = array<i32>} : memref<2x8x512xf32, #tpu.memory_space<vmem>>, vector<2x8x512xf32>,
    return
  }
  func.func @transform_0(%arg0: i32) -> (i32, i32, i32) {
    %c0_i32 = arith.constant 0 : i32
    %c0_i32_0 = arith.constant 0 : i32
    %c0_i32_1 = arith.constant 0 : i32
    return %arg0, %c0_i32, %c0_i32_0 : i32, i32, i32
  }
  func.func @transform_1(%arg0: i32) -> (i32, i32) {
    %c0_i32 = arith.constant 0 : i32
    %c0_i32_0 = arith.constant 0 : i32
    %c0_i32_1 = arith.constant 0 : i32
    return %c0_i32, %c0_i32_0 : i32, i32
  }
  func.func @transform_2(%arg0: i32) -> (i32, i32) {
    %c0_i32 = arith.constant 0 : i32
    %c0_i32_0 = arith.constant 0 : i32
    %c0_i32_1 = arith.constant 0 : i32
    return %c0_i32, %c0_i32_0 : i32, i32
  }
  func.func @transform_3(%arg0: i32) -> (i32, i32, i32) {
    %c0_i32 = arith.constant 0 : i32
    %c0_i32_0 = arith.constant 0 : i32
    %c0_i32_1 = arith.constant 0 : i32
    return %arg0, %c0_i32, %c0_i32_0 : i32, i32, i32
  }
}

module attributes {stable_mosaic.version = 11 : i64} {
  func.func @_bnrelu_conv_stats_kernel(%arg0: i32, %arg1: i32, %arg2: memref<2x8x512xbf16, #tpu.memory_space<vmem>>, %arg3: memref<8x1xf32, #tpu.memory_space<vmem>>, %arg4: memref<8x1xf32, #tpu.memory_space<vmem>>, %arg5: memref<8x72xbf16, #tpu.memory_space<vmem>>, %arg6: memref<8x1xf32, #tpu.memory_space<vmem>>, %arg7: memref<1x512xf32, #tpu.memory_space<vmem>>, %arg8: memref<2x8x512xbf16, #tpu.memory_space<vmem>>, %arg9: memref<1x8x1xf32, #tpu.memory_space<vmem>>, %arg10: memref<1x8x1xf32, #tpu.memory_space<vmem>>) attributes {dimension_semantics = [#tpu.dimension_semantics<parallel>, #tpu.dimension_semantics<parallel>], iteration_bounds = array<i64: 1, 1>, scalar_prefetch = 0 : i64, scratch_operands = 0 : i64, tpu.core_type = #tpu.core_type<tc>, window_params = [{transform_indices = @transform_0, window_bounds = array<i64: 2, 8, 512>}, {pipeline_mode = #tpu.pipeline_mode<synchronous>, transform_indices = @transform_1, window_bounds = array<i64: 8, 1>}, {pipeline_mode = #tpu.pipeline_mode<synchronous>, transform_indices = @transform_2, window_bounds = array<i64: 8, 1>}, {transform_indices = @transform_3, window_bounds = array<i64: 8, 72>}, {transform_indices = @transform_4, window_bounds = array<i64: 8, 1>}, {pipeline_mode = #tpu.pipeline_mode<synchronous>, transform_indices = @transform_5, window_bounds = array<i64: 1, 512>}, {transform_indices = @transform_6, window_bounds = array<i64: 2, 8, 512>}, {transform_indices = @transform_7, window_bounds = array<i64: 1, 8, 1>}, {transform_indices = @transform_8, window_bounds = array<i64: 1, 8, 1>}]} {
    %c0 = arith.constant 0 : index
    %c0_0 = arith.constant 0 : index
    %c0_1 = arith.constant 0 : index
    %0 = vector.load %arg2[%c0, %c0_0, %c0_1] : memref<2x8x512xbf16, #tpu.memory_space<vmem>>, vector<2x8x512xbf16>
    %1 = arith.extf %0 : vector<2x8x512xbf16> to vector<2x8x512xf32>
    %c0_2 = arith.constant 0 : index
    %c0_3 = arith.constant 0 : index
    %2 = vector.load %arg3[%c0_2, %c0_3] : memref<8x1xf32, #tpu.memory_space<vmem>>, vector<8x1xf32>
    %3 = vector.shape_cast %2 : vector<8x1xf32> to vector<1x8x1xf32>
    %4 = vector.broadcast %3 : vector<1x8x1xf32> to vector<2x8x512xf32>
    %5 = arith.mulf %1, %4 : vector<2x8x512xf32>
    %c0_4 = arith.constant 0 : index
    %c0_5 = arith.constant 0 : index
    %6 = vector.load %arg4[%c0_4, %c0_5] : memref<8x1xf32, #tpu.memory_space<vmem>>, vector<8x1xf32>
    %7 = vector.shape_cast %6 : vector<8x1xf32> to vector<1x8x1xf32>
    %8 = vector.broadcast %7 : vector<1x8x1xf32> to vector<2x8x512xf32>
    %9 = arith.addf %5, %8 : vector<2x8x512xf32>
    %cst = arith.constant 0.000000e+00 : f32
    %10 = vector.broadcast %cst : f32 to vector<2x8x512xf32>
    %11 = arith.maximumf %9, %10 : vector<2x8x512xf32>
    %c0_6 = arith.constant 0 : index
    %c0_7 = arith.constant 0 : index
    %12 = vector.load %arg7[%c0_6, %c0_7] : memref<1x512xf32, #tpu.memory_space<vmem>>, vector<1x512xf32>
    %13 = vector.shape_cast %12 : vector<1x512xf32> to vector<1x1x512xf32>
    %14 = vector.broadcast %13 : vector<1x1x512xf32> to vector<2x8x512xf32>
    %15 = arith.mulf %11, %14 : vector<2x8x512xf32>
    %c0_8 = arith.constant 0 : index
    %c0_9 = arith.constant 0 : index
    %16 = vector.load %arg5[%c0_8, %c0_9] : memref<8x72xbf16, #tpu.memory_space<vmem>>, vector<8x72xbf16>
    %c0_10 = arith.constant 0 : index
    %c0_11 = arith.constant 0 : index
    %17 = vector.load %arg6[%c0_10, %c0_11] : memref<8x1xf32, #tpu.memory_space<vmem>>, vector<8x1xf32>
    %c0_12 = arith.constant 0 : index
    %c0_13 = arith.constant 0 : index
    %18 = vector.load %arg7[%c0_12, %c0_13] : memref<1x512xf32, #tpu.memory_space<vmem>>, vector<1x512xf32>
    %19 = vector.extract_strided_slice %15 {offsets = [0, 0, 109], sizes = [1, 8, 288], strides = [1, 1, 1]} : vector<2x8x512xf32> to vector<1x8x288xf32>
    %20 = vector.shape_cast %19 : vector<1x8x288xf32> to vector<8x288xf32>
    %21 = vector.extract_strided_slice %15 {offsets = [1, 0, 109], sizes = [1, 8, 288], strides = [1, 1, 1]} : vector<2x8x512xf32> to vector<1x8x288xf32>
    %22 = vector.shape_cast %21 : vector<1x8x288xf32> to vector<8x288xf32>
    %23 = tpu.concatenate %20, %22 in 1 : vector<8x288xf32>, vector<8x288xf32> -> vector<8x576xf32>
    %24 = vector.extract_strided_slice %15 {offsets = [0, 0, 110], sizes = [1, 8, 288], strides = [1, 1, 1]} : vector<2x8x512xf32> to vector<1x8x288xf32>
    %25 = vector.shape_cast %24 : vector<1x8x288xf32> to vector<8x288xf32>
    %26 = vector.extract_strided_slice %15 {offsets = [1, 0, 110], sizes = [1, 8, 288], strides = [1, 1, 1]} : vector<2x8x512xf32> to vector<1x8x288xf32>
    %27 = vector.shape_cast %26 : vector<1x8x288xf32> to vector<8x288xf32>
    %28 = tpu.concatenate %25, %27 in 1 : vector<8x288xf32>, vector<8x288xf32> -> vector<8x576xf32>
    %29 = vector.extract_strided_slice %15 {offsets = [0, 0, 111], sizes = [1, 8, 288], strides = [1, 1, 1]} : vector<2x8x512xf32> to vector<1x8x288xf32>
    %30 = vector.shape_cast %29 : vector<1x8x288xf32> to vector<8x288xf32>
    %31 = vector.extract_strided_slice %15 {offsets = [1, 0, 111], sizes = [1, 8, 288], strides = [1, 1, 1]} : vector<2x8x512xf32> to vector<1x8x288xf32>
    %32 = vector.shape_cast %31 : vector<1x8x288xf32> to vector<8x288xf32>
    %33 = tpu.concatenate %30, %32 in 1 : vector<8x288xf32>, vector<8x288xf32> -> vector<8x576xf32>
    %34 = vector.extract_strided_slice %15 {offsets = [0, 0, 127], sizes = [1, 8, 288], strides = [1, 1, 1]} : vector<2x8x512xf32> to vector<1x8x288xf32>
    %35 = vector.shape_cast %34 : vector<1x8x288xf32> to vector<8x288xf32>
    %36 = vector.extract_strided_slice %15 {offsets = [1, 0, 127], sizes = [1, 8, 288], strides = [1, 1, 1]} : vector<2x8x512xf32> to vector<1x8x288xf32>
    %37 = vector.shape_cast %36 : vector<1x8x288xf32> to vector<8x288xf32>
    %38 = tpu.concatenate %35, %37 in 1 : vector<8x288xf32>, vector<8x288xf32> -> vector<8x576xf32>
    %39 = vector.extract_strided_slice %15 {offsets = [0, 0, 128], sizes = [1, 8, 288], strides = [1, 1, 1]} : vector<2x8x512xf32> to vector<1x8x288xf32>
    %40 = vector.shape_cast %39 : vector<1x8x288xf32> to vector<8x288xf32>
    %41 = vector.extract_strided_slice %15 {offsets = [1, 0, 128], sizes = [1, 8, 288], strides = [1, 1, 1]} : vector<2x8x512xf32> to vector<1x8x288xf32>
    %42 = vector.shape_cast %41 : vector<1x8x288xf32> to vector<8x288xf32>
    %43 = tpu.concatenate %40, %42 in 1 : vector<8x288xf32>, vector<8x288xf32> -> vector<8x576xf32>
    %44 = vector.extract_strided_slice %15 {offsets = [0, 0, 129], sizes = [1, 8, 288], strides = [1, 1, 1]} : vector<2x8x512xf32> to vector<1x8x288xf32>
    %45 = vector.shape_cast %44 : vector<1x8x288xf32> to vector<8x288xf32>
    %46 = vector.extract_strided_slice %15 {offsets = [1, 0, 129], sizes = [1, 8, 288], strides = [1, 1, 1]} : vector<2x8x512xf32> to vector<1x8x288xf32>
    %47 = vector.shape_cast %46 : vector<1x8x288xf32> to vector<8x288xf32>
    %48 = tpu.concatenate %45, %47 in 1 : vector<8x288xf32>, vector<8x288xf32> -> vector<8x576xf32>
    %49 = vector.extract_strided_slice %15 {offsets = [0, 0, 145], sizes = [1, 8, 288], strides = [1, 1, 1]} : vector<2x8x512xf32> to vector<1x8x288xf32>
    %50 = vector.shape_cast %49 : vector<1x8x288xf32> to vector<8x288xf32>
    %51 = vector.extract_strided_slice %15 {offsets = [1, 0, 145], sizes = [1, 8, 288], strides = [1, 1, 1]} : vector<2x8x512xf32> to vector<1x8x288xf32>
    %52 = vector.shape_cast %51 : vector<1x8x288xf32> to vector<8x288xf32>
    %53 = tpu.concatenate %50, %52 in 1 : vector<8x288xf32>, vector<8x288xf32> -> vector<8x576xf32>
    %54 = vector.extract_strided_slice %15 {offsets = [0, 0, 146], sizes = [1, 8, 288], strides = [1, 1, 1]} : vector<2x8x512xf32> to vector<1x8x288xf32>
    %55 = vector.shape_cast %54 : vector<1x8x288xf32> to vector<8x288xf32>
    %56 = vector.extract_strided_slice %15 {offsets = [1, 0, 146], sizes = [1, 8, 288], strides = [1, 1, 1]} : vector<2x8x512xf32> to vector<1x8x288xf32>
    %57 = vector.shape_cast %56 : vector<1x8x288xf32> to vector<8x288xf32>
    %58 = tpu.concatenate %55, %57 in 1 : vector<8x288xf32>, vector<8x288xf32> -> vector<8x576xf32>
    %59 = vector.extract_strided_slice %15 {offsets = [0, 0, 147], sizes = [1, 8, 288], strides = [1, 1, 1]} : vector<2x8x512xf32> to vector<1x8x288xf32>
    %60 = vector.shape_cast %59 : vector<1x8x288xf32> to vector<8x288xf32>
    %61 = vector.extract_strided_slice %15 {offsets = [1, 0, 147], sizes = [1, 8, 288], strides = [1, 1, 1]} : vector<2x8x512xf32> to vector<1x8x288xf32>
    %62 = vector.shape_cast %61 : vector<1x8x288xf32> to vector<8x288xf32>
    %63 = tpu.concatenate %60, %62 in 1 : vector<8x288xf32>, vector<8x288xf32> -> vector<8x576xf32>
    %64 = tpu.concatenate %23, %28, %33, %38, %43, %48, %53, %58, %63 in 0 : vector<8x576xf32>, vector<8x576xf32>, vector<8x576xf32>, vector<8x576xf32>, vector<8x576xf32>, vector<8x576xf32>, vector<8x576xf32>, vector<8x576xf32>, vector<8x576xf32> -> vector<72x576xf32>
    %65 = arith.truncf %64 : vector<72x576xf32> to vector<72x576xbf16>
    %cst_14 = arith.constant dense<0.000000e+00> : vector<8x576xf32>
    %66 = tpu.matmul %16, %65, %cst_14 {dimension_numbers = #tpu.dot_dimension_numbers<[1], [0], [0], [1], [0, 0, 1, 1], [], []>} : vector<8x72xbf16>, vector<72x576xbf16>, vector<8x576xf32> -> vector<8x576xf32>
    %67 = vector.extract_strided_slice %18 {offsets = [0, 128], sizes = [1, 288], strides = [1, 1]} : vector<1x512xf32> to vector<1x288xf32>
    %68 = tpu.concatenate %67, %67 in 1 : vector<1x288xf32>, vector<1x288xf32> -> vector<1x576xf32>
    %69 = vector.broadcast %17 : vector<8x1xf32> to vector<8x576xf32>
    %70 = arith.addf %66, %69 : vector<8x576xf32>
    %71 = vector.broadcast %68 : vector<1x576xf32> to vector<8x576xf32>
    %72 = arith.mulf %70, %71 : vector<8x576xf32>
    %cst_15 = arith.constant dense<0.000000e+00> : vector<8xf32>
    %73 = vector.multi_reduction <add>, %72, %cst_15 [1] : vector<8x576xf32> to vector<8xf32>
    %74 = vector.shape_cast %73 : vector<8xf32> to vector<8x1xf32>
    %cst_16 = arith.constant 0.001953125 : f32
    %75 = vector.broadcast %cst_16 : f32 to vector<8x1xf32>
    %76 = arith.mulf %74, %75 : vector<8x1xf32>
    %77 = vector.broadcast %76 : vector<8x1xf32> to vector<8x576xf32>
    %78 = arith.subf %72, %77 : vector<8x576xf32>
    %79 = vector.broadcast %68 : vector<1x576xf32> to vector<8x576xf32>
    %80 = arith.mulf %78, %79 : vector<8x576xf32>
    %81 = arith.mulf %80, %80 : vector<8x576xf32>
    %cst_17 = arith.constant dense<0.000000e+00> : vector<8xf32>
    %82 = vector.multi_reduction <add>, %81, %cst_17 [1] : vector<8x576xf32> to vector<8xf32>
    %83 = vector.shape_cast %82 : vector<8xf32> to vector<8x1xf32>
    %84 = vector.shape_cast %74 : vector<8x1xf32> to vector<1x8x1xf32>
    %c0_18 = arith.constant 0 : index
    %c0_19 = arith.constant 0 : index
    %c0_20 = arith.constant 0 : index
    %85 = vector.load %arg9[%c0_18, %c0_19, %c0_20] : memref<1x8x1xf32, #tpu.memory_space<vmem>>, vector<1x8x1xf32>
    tpu.vector_store %arg9[%c0_18, %c0_19, %c0_20], %84 {strides = array<i32>} : memref<1x8x1xf32, #tpu.memory_space<vmem>>, vector<1x8x1xf32>,
    %86 = vector.shape_cast %83 : vector<8x1xf32> to vector<1x8x1xf32>
    %c0_21 = arith.constant 0 : index
    %c0_22 = arith.constant 0 : index
    %c0_23 = arith.constant 0 : index
    %87 = vector.load %arg10[%c0_21, %c0_22, %c0_23] : memref<1x8x1xf32, #tpu.memory_space<vmem>>, vector<1x8x1xf32>
    tpu.vector_store %arg10[%c0_21, %c0_22, %c0_23], %86 {strides = array<i32>} : memref<1x8x1xf32, #tpu.memory_space<vmem>>, vector<1x8x1xf32>,
    %cst_24 = arith.constant 0.000000e+00 : bf16
    %88 = vector.broadcast %cst_24 : bf16 to vector<2x8x128xbf16>
    %c0_25 = arith.constant 0 : index
    %c0_26 = arith.constant 0 : index
    %c0_27 = arith.constant 0 : index
    %89 = vector.load %arg8[%c0_25, %c0_26, %c0_27] : memref<2x8x512xbf16, #tpu.memory_space<vmem>>, vector<2x8x128xbf16>
    tpu.vector_store %arg8[%c0_25, %c0_26, %c0_27], %88 {strides = array<i32>} : memref<2x8x512xbf16, #tpu.memory_space<vmem>>, vector<2x8x128xbf16>,
    %cst_28 = arith.constant 0.000000e+00 : bf16
    %90 = vector.broadcast %cst_28 : bf16 to vector<2x8x96xbf16>
    %c0_29 = arith.constant 0 : index
    %c0_30 = arith.constant 0 : index
    %c416 = arith.constant 416 : index
    %91 = vector.load %arg8[%c0_29, %c0_30, %c416] : memref<2x8x512xbf16, #tpu.memory_space<vmem>>, vector<2x8x96xbf16>
    tpu.vector_store %arg8[%c0_29, %c0_30, %c416], %90 {strides = array<i32>} : memref<2x8x512xbf16, #tpu.memory_space<vmem>>, vector<2x8x96xbf16>,
    %92 = vector.extract_strided_slice %72 {offsets = [0, 0], sizes = [8, 288], strides = [1, 1]} : vector<8x576xf32> to vector<8x288xf32>
    %93 = arith.truncf %92 : vector<8x288xf32> to vector<8x288xbf16>
    %c0_31 = arith.constant 0 : index
    %c0_32 = arith.constant 0 : index
    %c128 = arith.constant 128 : index
    %94 = vector.load %arg8[%c0_31, %c0_32, %c128] : memref<2x8x512xbf16, #tpu.memory_space<vmem>>, vector<1x8x288xbf16>
    %95 = vector.shape_cast %94 : vector<1x8x288xbf16> to vector<8x288xbf16>
    %96 = vector.shape_cast %93 : vector<8x288xbf16> to vector<1x8x288xbf16>
    tpu.vector_store %arg8[%c0_31, %c0_32, %c128], %96 {strides = array<i32>} : memref<2x8x512xbf16, #tpu.memory_space<vmem>>, vector<1x8x288xbf16>,
    %97 = vector.extract_strided_slice %72 {offsets = [0, 288], sizes = [8, 288], strides = [1, 1]} : vector<8x576xf32> to vector<8x288xf32>
    %98 = arith.truncf %97 : vector<8x288xf32> to vector<8x288xbf16>
    %c1 = arith.constant 1 : index
    %c0_33 = arith.constant 0 : index
    %c128_34 = arith.constant 128 : index
    %99 = vector.load %arg8[%c1, %c0_33, %c128_34] : memref<2x8x512xbf16, #tpu.memory_space<vmem>>, vector<1x8x288xbf16>
    %100 = vector.shape_cast %99 : vector<1x8x288xbf16> to vector<8x288xbf16>
    %101 = vector.shape_cast %98 : vector<8x288xbf16> to vector<1x8x288xbf16>
    tpu.vector_store %arg8[%c1, %c0_33, %c128_34], %101 {strides = array<i32>} : memref<2x8x512xbf16, #tpu.memory_space<vmem>>, vector<1x8x288xbf16>,
    return
  }
  func.func @transform_0(%arg0: i32, %arg1: i32) -> (i32, i32, i32) {
    %c0_i32 = arith.constant 0 : i32
    %c0_i32_0 = arith.constant 0 : i32
    %c0_i32_1 = arith.constant 0 : i32
    return %arg0, %c0_i32, %c0_i32_0 : i32, i32, i32
  }
  func.func @transform_1(%arg0: i32, %arg1: i32) -> (i32, i32) {
    %c0_i32 = arith.constant 0 : i32
    %c0_i32_0 = arith.constant 0 : i32
    %c0_i32_1 = arith.constant 0 : i32
    return %c0_i32, %c0_i32_0 : i32, i32
  }
  func.func @transform_2(%arg0: i32, %arg1: i32) -> (i32, i32) {
    %c0_i32 = arith.constant 0 : i32
    %c0_i32_0 = arith.constant 0 : i32
    %c0_i32_1 = arith.constant 0 : i32
    return %c0_i32, %c0_i32_0 : i32, i32
  }
  func.func @transform_3(%arg0: i32, %arg1: i32) -> (i32, i32) {
    %c0_i32 = arith.constant 0 : i32
    %c0_i32_0 = arith.constant 0 : i32
    return %arg1, %c0_i32 : i32, i32
  }
  func.func @transform_4(%arg0: i32, %arg1: i32) -> (i32, i32) {
    %c0_i32 = arith.constant 0 : i32
    %c0_i32_0 = arith.constant 0 : i32
    return %arg1, %c0_i32 : i32, i32
  }
  func.func @transform_5(%arg0: i32, %arg1: i32) -> (i32, i32) {
    %c0_i32 = arith.constant 0 : i32
    %c0_i32_0 = arith.constant 0 : i32
    %c0_i32_1 = arith.constant 0 : i32
    return %c0_i32, %c0_i32_0 : i32, i32
  }
  func.func @transform_6(%arg0: i32, %arg1: i32) -> (i32, i32, i32) {
    %c0_i32 = arith.constant 0 : i32
    %c0_i32_0 = arith.constant 0 : i32
    return %arg0, %arg1, %c0_i32 : i32, i32, i32
  }
  func.func @transform_7(%arg0: i32, %arg1: i32) -> (i32, i32, i32) {
    %c0_i32 = arith.constant 0 : i32
    %c0_i32_0 = arith.constant 0 : i32
    return %arg0, %arg1, %c0_i32 : i32, i32, i32
  }
  func.func @transform_8(%arg0: i32, %arg1: i32) -> (i32, i32, i32) {
    %c0_i32 = arith.constant 0 : i32
    %c0_i32_0 = arith.constant 0 : i32
    return %arg0, %arg1, %c0_i32 : i32, i32, i32
  }
}

</mosaic_0001>

<bundles_post_ra>
// kernel: conv_block_forward.5
= control target key start
LH: loop header
LB: loop body
LE: loop exit
PB: predicated region body
PF: predicated region fallthrough
CT: control target
= control target key end

     0   :  { %v76_v0 = vmov 0   ;;  %s139_s1 = inlined_call_operand.vmem [shape: f32[8,1], index: 1, kind: input, shape index: {}]   ;;  %s140_s2 = inlined_call_operand.vmem [shape: f32[8,1], index: 2, kind: input, shape index: {}]   ;;  %s141_s0 = inlined_call_operand.vmem [shape: bf16[2,8,512], index: 0, kind: input, shape index: {}]   ;;  %s142_s3 = inlined_call_operand.vmem [shape: f32[2,8,512], index: 3, kind: output, shape index: {}]  }
   0x1   :  { %75 = vset.pattern.permute.xlu0 %v76_v0  ;;  %v26_v1 = vld [vmem:[%s139_s1] sm:$0xff]  ;;  %v15_v4 = vld [vmem:[%s141_s0 + $0x8] sm:$0xff]  ;;  %v16_v5 = vld [vmem:[%s141_s0 + $0x10] sm:$0xff] }
   0x2   :  { %29 = vperm.xlu0 %75, %v26_v1   ;;  %v40_v2 = vld [vmem:[%s140_s2] sm:$0xff]  ;;  %v17_v6 = vld [vmem:[%s141_s0 + $0x18] sm:$0xff]  ;;  %v20_v9 = vunpack.c.l.bf16 %v15_v4  ;;  %v21_v10 = vunpack.c.h.bf16 %v15_v4  ;;  %v22_v12 = vunpack.c.l.bf16 %v16_v5  ;;  %v23_v13 = vunpack.c.h.bf16 %v16_v5 }
   0x3   :  { %v14_v3 = vld [vmem:[%s141_s0] sm:$0xff]  ;;  %v24_v14 = vunpack.c.l.bf16 %v17_v6  ;;  %v25_v15 = vunpack.c.h.bf16 %v17_v6 }
   0x4   :  { %v18_v7 = vunpack.c.l.bf16 %v14_v3  ;;  %v19_v8 = vunpack.c.h.bf16 %v14_v3 }
   0x6   :  { %43 = vperm.xlu0 %75, %v40_v2  }
  0x81   :  { %v30_v11 = vpop.permute.xlu0 %29 }
  0x82   :  { %v32_v16 = vmul.f32 %v30_v11, %v18_v7  ;;  %v33_v17 = vmul.f32 %v30_v11, %v19_v8  ;;  %v34_v18 = vmul.f32 %v30_v11, %v20_v9  ;;  %v35_v19 = vmul.f32 %v30_v11, %v21_v10 }
  0x83   :  { %v36_v21 = vmul.f32 %v30_v11, %v22_v12  ;;  %v37_v22 = vmul.f32 %v30_v11, %v23_v13  ;;  %v38_v23 = vmul.f32 %v30_v11, %v24_v14  ;;  %v39_v24 = vmul.f32 %v30_v11, %v25_v15 }
  0x85   :  { %v44_v20 = vpop.permute.xlu0 %43 }
  0x86   :  { %v46_v25 = vadd.f32 %v44_v20, %v32_v16  ;;  %v47_v26 = vadd.f32 %v44_v20, %v33_v17  ;;  %v48_v27 = vadd.f32 %v44_v20, %v34_v18  ;;  %v49_v28 = vadd.f32 %v44_v20, %v35_v19 }
  0x87   :  { %v50_v29 = vadd.f32 %v44_v20, %v36_v21  ;;  %v51_v30 = vadd.f32 %v44_v20, %v37_v22  ;;  %v52_v31 = vadd.f32 %v44_v20, %v38_v23  ;;  %v53_v32 = vadd.f32 %v44_v20, %v39_v24 }
  0x88   :  { %v54_v33 = vmax.f32 %v46_v25, 0.0  ;;  %v55_v34 = vmax.f32 %v47_v26, 0.0  ;;  %v56_v35 = vmax.f32 %v48_v27, 0.0  ;;  %v57_v36 = vmax.f32 %v49_v28, 0.0 }
  0x89   :  { %v58_v37 = vmax.f32 %v50_v29, 0.0  ;;  %v59_v38 = vmax.f32 %v51_v30, 0.0  ;;  %v60_v39 = vmax.f32 %v52_v31, 0.0  ;;  %v61_v40 = vmax.f32 %v53_v32, 0.0 }
  0x8a   :  { %62 = vst [vmem:[%s142_s3] sm:$0xff] %v54_v33  ;;  %63 = vst [vmem:[%s142_s3 + $0x8] sm:$0xff] %v55_v34 }
  0x8b   :  { %64 = vst [vmem:[%s142_s3 + $0x10] sm:$0xff] %v56_v35  ;;  %65 = vst [vmem:[%s142_s3 + $0x18] sm:$0xff] %v57_v36 }
  0x8c   :  { %66 = vst [vmem:[%s142_s3 + $0x20] sm:$0xff] %v58_v37  ;;  %67 = vst [vmem:[%s142_s3 + $0x28] sm:$0xff] %v59_v38 }
  0x8d   :  { %68 = vst [vmem:[%s142_s3 + $0x30] sm:$0xff] %v60_v39  ;;  %69 = vst [vmem:[%s142_s3 + $0x38] sm:$0xff] %v61_v40 }

// kernel: conv_block_forward.4
= control target key start
LH: loop header
LB: loop body
LE: loop exit
PB: predicated region body
PF: predicated region fallthrough
CT: control target
= control target key end

     0   :  { %v832_v0 = vmov 0   ;;  %v77_v3 = vlaneseq  ;;  %s834_s13 = smov 18   ;;  %s835_s14 = smov 17   ;;  %vm119_vm0 = vcmask 154624   ;;  %vm155_vm1 = vcmask 146432   ;;  %s1154_s1 = inlined_call_operand.vmem [shape: f32[8,1], index: 1, kind: input, shape index: {}]   ;;  %s1155_s2 = inlined_call_operand.vmem [shape: f32[8,1], index: 2, kind: input, shape index: {}]   ;;  %s1156_s0 = inlined_call_operand.vmem [shape: bf16[2,8,512], index: 0, kind: input, shape index: {}]   ;;  %s1157_s5 = inlined_call_operand.vmem [shape: f32[1,512], index: 5, kind: input, shape index: {}]   ;;  %s1158_s4 = inlined_call_operand.vmem [shape: f32[8,1], index: 4, kind: input, shape index: {}]   ;;  %s1159_s3 = inlined_call_operand.vmem [shape: bf16[8,72], index: 3, kind: input, shape index: {}]   ;;  %s1160_s6 = inlined_call_operand.vmem [shape: bf16[2,8,512], index: 6, kind: output, shape index: {0}]   ;;  %s1161_s7 = inlined_call_operand.vmem [shape: f32[1,8,1], index: 7, kind: output, shape index: {1}]   ;;  %s1162_s8 = inlined_call_operand.vmem [shape: f32[1,8,1], index: 8, kind: output, shape index: {2}]  }
   0x1   :  { %706 = vset.pattern.permute.xlu0 %v832_v0  ;;  %v39_v1 = vld [vmem:[%s1154_s1] sm:$0xff]  ;;  %446 = vmatprep.mubr.bf16.mxu0 %v832_v0  ;;  %v28_v5 = vld [vmem:[%s1156_s0 + $0x8] sm:$0xff]  ;;  %v29_v40 = vld [vmem:[%s1156_s0 + $0x10] sm:$0xff]  ;;  %s836_s17 = smov 1   ;;  %s837_s20 = smov 127   ;;  %vm186_vm2 = vcmask 138240  }
   0x2   :  { %42 = vperm.xlu0 %706, %v39_v1   ;;  %487 = vmatprep.mubr.bf16.mxu1 %v832_v0  ;;  %v53_v2 = vld [vmem:[%s1155_s2] sm:$0xff]  ;;  %v78_v6 = vshrl.u32 %v77_v3, 7  ;;  %v33_v8 = vunpack.c.l.bf16 %v28_v5  ;;  %v34_v9 = vunpack.c.h.bf16 %v28_v5  ;;  %v35_v41 = vunpack.c.l.bf16 %v29_v40  ;;  %v30_v44 = vld [vmem:[%s1156_s0 + $0x18] sm:$0xff]  ;;  %s838_s21 = smov 111   ;;  %s840_s22 = smov 109   ;;  %594 = vst [vmem:[%s1160_s6] sm:$0xf] %v832_v0 }
   0x3   :  { %v27_v4 = vld [vmem:[%s1156_s0] sm:$0xff]  ;;  %v36_v42 = vunpack.c.h.bf16 %v29_v40  ;;  %v37_v49 = vunpack.c.l.bf16 %v30_v44  ;;  %v38_v50 = vunpack.c.h.bf16 %v30_v44  ;;  %s839_s0 = smov 110   ;;  %s841_s23 = smov 51   ;;  %vm217_vm3 = vcmask 7168   ;;  %595 = vst [vmem:[%s1160_s6 + $0x10] sm:$0xf] %v832_v0 }
   0x4   :  { %v32_v7 = vunpack.c.h.bf16 %v27_v4  ;;  %v83_v11 = vsub.s32 1, %v78_v6  ;;  %v87_v12 = vsub.s32 2, %v78_v6  ;;  %v31_v13 = vunpack.c.l.bf16 %v27_v4  ;;  %v75_v14 = vld [vmem:[%s1157_s5] sm:$0xf]  ;;  %s833_s5 = smov 19   ;;  %s842_s24 = smov 50  }
   0x5   :  { %v91_v15 = vsub.s32 3, %v78_v6  ;;  %v916_v16 = vsub.s32 0, %v78_v6  ;;  %s843_s25 = smov 49   ;;  %s844_s26 = smov 33   ;;  %v106_v3 = vld [vmem:[%s1158_s4] sm:$0xff]  ;;  %vm258_vm4 = vcmask 1039360  }
   0x6   :  { %56 = vperm.xlu0 %706, %v53_v2   ;;  %v918_v20 = vrot.slane %v75_v14, %v83_v11  ;;  %v920_v21 = vrot.slane %v75_v14, %v87_v12  ;;  %s845_s27 = smov 32   ;;  %s846_s28 = smov 31   ;;  %vm283_vm5 = vcmask 908288   ;;  %vm308_vm6 = vcmask 900096  }
   0x7   :  { %v922_v24 = vrot.slane %v75_v14, %v91_v15  ;;  %v80_v29 = vrot.slane %v75_v14, %v916_v16  ;;  %s847_s29 = smov 15   ;;  %s848_s30 = smov 14   ;;  %vm333_vm7 = vcmask 891904   ;;  %vm398_vm8 = vcmask 1043456  }
   0x8   :  { %s849_s9 = smov 13   ;;  %vm138_vm9 = vcmask 416768   ;;  %vm170_vm10 = vcmask 408576   ;;  %vm394_vm11 = vcmask 588800   ;;  %vm145_vm12 = vcmask 261120  }
   0x9   :  { %vm851_vm13 = vmmov 0   ;;  %vm232_vm14 = vcmask 269312   ;;  %vm201_vm15 = vcmask 400384  }
  0x81   :  { %v43_v10 = vpop.permute.xlu0 %42 }
  0x82   :  { %v46_v17 = vmul.f32 %v43_v10, %v32_v7  ;;  %v47_v18 = vmul.f32 %v43_v10, %v33_v8  ;;  %v48_v19 = vmul.f32 %v43_v10, %v34_v9  ;;  %v45_v23 = vmul.f32 %v43_v10, %v31_v13 }
  0x83   :  { %v49_v45 = vmul.f32 %v43_v10, %v35_v41  ;;  %v50_v46 = vmul.f32 %v43_v10, %v36_v42  ;;  %v51_v53 = vmul.f32 %v43_v10, %v37_v49  ;;  %v52_v54 = vmul.f32 %v43_v10, %v38_v50 }
  0x85   :  { %v57_v22 = vpop.permute.xlu0 %56 }
  0x86   :  { %v60_v25 = vadd.f32 %v57_v22, %v46_v17  ;;  %v61_v26 = vadd.f32 %v57_v22, %v47_v18  ;;  %v62_v27 = vadd.f32 %v57_v22, %v48_v19  ;;  %v59_v28 = vadd.f32 %v57_v22, %v45_v23 }
  0x87   :  { %v63_v47 = vadd.f32 %v57_v22, %v49_v45  ;;  %v64_v48 = vadd.f32 %v57_v22, %v50_v46  ;;  %v65_v55 = vadd.f32 %v57_v22, %v51_v53  ;;  %v66_v56 = vadd.f32 %v57_v22, %v52_v54 }
  0x88   :  { %v68_v30 = vmax.f32 %v60_v25, 0.0  ;;  %v69_v31 = vmax.f32 %v61_v26, 0.0  ;;  %v70_v32 = vmax.f32 %v62_v27, 0.0  ;;  %v67_v33 = vmax.f32 %v59_v28, 0.0 }
  0x89   :  { %v71_v51 = vmax.f32 %v63_v47, 0.0  ;;  %v72_v52 = vmax.f32 %v64_v48, 0.0  ;;  %v73_v59 = vmax.f32 %v65_v55, 0.0  ;;  %v74_v60 = vmax.f32 %v66_v56, 0.0 }
  0x8a   :  { %v926_v34 = vmul.f32 %v918_v20, %v68_v30  ;;  %v929_v35 = vmul.f32 %v920_v21, %v69_v31  ;;  %v932_v36 = vmul.f32 %v922_v24, %v70_v32  ;;  %v97_v37 = vmul.f32 %v80_v29, %v67_v33 }
  0x8b   :  { %v101_v57 = vmul.f32 %v80_v29, %v71_v51  ;;  %v102_v58 = vmul.f32 %v918_v20, %v72_v52  ;;  %v103_v62 = vmul.f32 %v920_v21, %v73_v59  ;;  %v104_v63 = vmul.f32 %v922_v24, %v74_v60 }
  0x8c   :  { %v707_v38 = vpack.i.bf16 %v929_v35, %v926_v34  ;;  %v717_v39 = vpack.i.bf16 %v932_v36, %v97_v37  ;;  %v747_v43 = vpack.i.bf16 %v932_v36, %v929_v35 }
  0x8d   :  { %v767_v61 = vpack.i.bf16 %v102_v58, %v101_v57  ;;  %v772_v1 = vpack.i.bf16 %v104_v63, %v103_v62  ;;  %v807_v2 = vpack.i.bf16 %v103_v62, %v102_v58 }
  0x8e   :  { %708 = vrot.lane.b32.xlu1 %v707_v38, %s833_s5  ;;  %718 = vrot.lane.b32.xlu0 %v717_v39, %s833_s5 }
  0x92   :  { %713 = vrot.lane.b32.xlu1 %v707_v38, %s834_s13  ;;  %728 = vrot.lane.b32.xlu0 %v707_v38, %s835_s14 }
  0x96   :  { %723 = vrot.lane.b32.xlu1 %v717_v39, %s834_s13  ;;  %738 = vrot.lane.b32.xlu0 %v717_v39, %s835_s14 }
  0x9a   :  { %733 = vrot.lane.b32.xlu1 %v707_v38, %s836_s17  ;;  %748 = vrot.lane.b32.xlu0 %v747_v43, %s837_s20 }
  0x9e   :  { %743 = vrot.lane.b32.xlu1 %v717_v39, %s836_s17  ;;  %753 = vrot.lane.b32.xlu0 %v747_v43, %s838_s21 }
  0xa2   :  { %252 = vrot.lane.b32.xlu1 %v926_v34, %s837_s20  ;;  %277 = vrot.lane.b32.xlu0 %v926_v34, %s838_s21  ;;  %s852_s21 = smov 96  }
  0xa6   :  { %758 = vrot.lane.b32.xlu1 %v747_v43, %s839_s0  ;;  %763 = vrot.lane.b32.xlu0 %v707_v38, %s840_s22 }
  0xaa   :  { %302 = vrot.lane.b32.xlu1 %v926_v34, %s839_s0  ;;  %768 = vrot.lane.b32.xlu0 %v767_v61, %s841_s23 }
  0xae   :  { %331 = vrot.lane.b32.xlu1 %v932_v36, %s840_s22  ;;  %778 = vrot.lane.b32.xlu0 %v767_v61, %s842_s24 }
  0xb2   :  { %773 = vrot.lane.b32.xlu1 %v772_v1, %s841_s23  ;;  %788 = vrot.lane.b32.xlu0 %v767_v61, %s843_s25 }
  0xb6   :  { %783 = vrot.lane.b32.xlu1 %v772_v1, %s842_s24  ;;  %798 = vrot.lane.b32.xlu0 %v767_v61, %s844_s26 }
  0xba   :  { %793 = vrot.lane.b32.xlu1 %v772_v1, %s843_s25  ;;  %808 = vrot.lane.b32.xlu0 %v807_v2, %s845_s27 }
  0xbe   :  { %803 = vrot.lane.b32.xlu1 %v772_v1, %s844_s26  ;;  %244 = vrot.lane.b32.xlu0 %v104_v63, %s845_s27 }
  0xc2   :  { %813 = vrot.lane.b32.xlu1 %v807_v2, %s846_s28  ;;  %818 = vrot.lane.b32.xlu0 %v807_v2, %s847_s29 }
  0xc6   :  { %268 = vrot.lane.b32.xlu1 %v104_v63, %s846_s28  ;;  %293 = vrot.lane.b32.xlu0 %v104_v63, %s847_s29 }
  0xca   :  { %823 = vrot.lane.b32.xlu1 %v807_v2, %s848_s30  ;;  %828 = vrot.lane.b32.xlu0 %v807_v2, %s849_s9 }
  0xce   :  { %318 = vrot.lane.b32.xlu1 %v104_v63, %s848_s30  ;;  %391 = vperm.xlu0 %706, %v106_v3  }
  0xd2   :  { %343 = vrot.lane.b32.xlu1 %v104_v63, %s849_s9  ;;  %379 = vrot.lane.b32.xlu0 %v920_v21, %s845_s27 }
  0xd6   :  { %377 = vrot.lane.b32.xlu1 %v918_v20, %s845_s27 }
  0xda   :  { %381 = vrot.lane.b32.xlu1 %v922_v24, %s845_s27 }
 0x100   :  { %v958_v4 = vpop.permute.xlu1 %708  ;;  %v960_v5 = vpop.permute.xlu0 %718 }
 0x101   :  { %v711_v6 = vunpack.i.h.bf16 %v958_v4  ;;  %v710_v7 = vunpack.i.l.bf16 %v958_v4  ;;  %v720_v12 = vunpack.i.l.bf16 %v960_v5 }
 0x103   :  { %v121_v13 = vsel %vm119_vm0, %v710_v7, %v711_v6  ;;  %v120_v25 = vsel %vm119_vm0, %v720_v12, %v710_v7 }
 0x104   :  { %v964_v8 = vpop.permute.xlu1 %713  ;;  %v968_v11 = vpop.permute.xlu0 %728 }
 0x105   :  { %v716_v9 = vunpack.i.h.bf16 %v964_v8  ;;  %v715_v10 = vunpack.i.l.bf16 %v964_v8  ;;  %v731_v22 = vunpack.i.h.bf16 %v968_v11  ;;  %v730_v23 = vunpack.i.l.bf16 %v968_v11 }
 0x107   :  { %v157_v14 = vsel %vm155_vm1, %v715_v10, %v716_v9  ;;  %v188_v38 = vsel %vm186_vm2, %v730_v23, %v731_v22 }
 0x108   :  { %v977_v15 = vpop.permute.xlu1 %723  ;;  %v353_v17 = vpack.c.bf16 %v157_v14, %v121_v13  ;;  %v980_v19 = vpop.permute.xlu0 %738 }
 0x109   :  { %v725_v18 = vunpack.i.l.bf16 %v977_v15  ;;  %v740_v37 = vunpack.i.l.bf16 %v980_v19 }
 0x10a   :  { %414 = vmatprep.subr.bf16.mxu0 %v353_v17 }
 0x10b   :  { %v156_v26 = vsel %vm155_vm1, %v725_v18, %v715_v10  ;;  %v187_v45 = vsel %vm186_vm2, %v740_v37, %v730_v23 }
 0x10c   :  { %v986_v27 = vpop.permute.xlu1 %733  ;;  %v352_v28 = vpack.c.bf16 %v156_v26, %v120_v25  ;;  %v990_v31 = vpop.permute.xlu0 %748 }
 0x10d   :  { %v736_v29 = vunpack.i.h.bf16 %v986_v27  ;;  %v735_v30 = vunpack.i.l.bf16 %v986_v27  ;;  %v751_v32 = vunpack.i.h.bf16 %v990_v31  ;;  %v750_v33 = vunpack.i.l.bf16 %v990_v31 }
 0x10e   :  { %415 = vmatpush1.bf16.msra.mxu0 %v352_v28  ;;  %v726_v28 = vunpack.i.h.bf16 %v977_v15 }
 0x10f   :  { %v219_v39 = vsel %vm217_vm3, %v735_v30, %v736_v29  ;;  %v260_v44 = vsel %vm258_vm4, %v750_v33, %v751_v32 }
 0x110   :  { %v1001_v40 = vpop.permute.xlu1 %743  ;;  %v358_v41 = vpack.c.bf16 %v219_v39, %v188_v38  ;;  %v1004_v43 = vpop.permute.xlu0 %753  ;;  %v363_v51 = vpack.c.bf16 %v260_v44, %v929_v35  ;;  %v1031_v38 = vld [vmem:[%s1159_s3] sm:$0xf]  ;;  %v721_v39 = vunpack.i.h.bf16 %v960_v5  ;;  %v850_v44 = vmov 0.0  }
 0x111   :  { %v745_v42 = vunpack.i.l.bf16 %v1001_v40  ;;  %v756_v52 = vunpack.i.h.bf16 %v1004_v43  ;;  %v755_v53 = vunpack.i.l.bf16 %v1004_v43  ;;  %v158_v5 = vsel %vm155_vm1, %v716_v9, %v726_v28 }
 0x112   :  { %416 = vmatprep.subr.bf16.mxu0 %v358_v41  ;;  %vm295_vm1 = vcmask 121856  }
 0x113   :  { %v218_v46 = vsel %vm217_vm3, %v745_v42, %v735_v30  ;;  %v285_v35 = vsel %vm283_vm5, %v755_v53, %v756_v52 }
 0x114   :  { %v253_v47 = vpop.permute.xlu1 %252  ;;  %v357_v48 = vpack.c.bf16 %v218_v46, %v187_v45  ;;  %v278_v50 = vpop.permute.xlu0 %277 }
 0x115   :  { %v259_v49 = vsel %vm258_vm4, %v253_v47, %v750_v33  ;;  %v284_v63 = vsel %vm283_vm5, %v278_v50, %v755_v53  ;;  %v122_v53 = vsel %vm119_vm0, %v711_v6, %v721_v39  ;;  %vm270_vm0 = vcmask 252928  }
 0x116   :  { %417 = vmatpush1.bf16.msra.mxu0 %v357_v48  ;;  %v362_v54 = vpack.c.bf16 %v259_v49, %v926_v34  ;;  %vm345_vm4 = vcmask 105472   ;;  %vm596_vm5 = vcmask 1043712  }
 0x117   :  { %418 = vmatprep.subr.bf16.mxu0 %v363_v51  ;;  %597 = vst.msk [vmem:[%s1160_s6 + $0xc] sm:$0xf] %vm596_vm5, %v832_v0  ;;  %598 = vst.msk [vmem:[%s1160_s6 + $0x1c] sm:$0xf] %vm596_vm5, %v832_v0 }
 0x118   :  { %v1014_v55 = vpop.permute.xlu1 %758  ;;  %v764_v58 = vpop.permute.xlu0 %763 }
 0x119   :  { %v761_v56 = vunpack.i.h.bf16 %v1014_v55  ;;  %v760_v57 = vunpack.i.l.bf16 %v1014_v55  ;;  %v766_v59 = vunpack.i.h.bf16 %v764_v58  ;;  %v765_v60 = vunpack.i.l.bf16 %v764_v58 }
 0x11a   :  { %419 = vmatpush1.bf16.msra.mxu0 %v362_v54 }
 0x11b   :  { %v310_v61 = vsel %vm308_vm6, %v760_v57, %v761_v56  ;;  %v334_v3 = vsel %vm333_vm7, %v765_v60, %v766_v59 }
 0x11c   :  { %v303_v34 = vpop.permute.xlu1 %302  ;;  %v368_v62 = vpack.c.bf16 %v310_v61, %v285_v35  ;;  %v769_v2 = vpop.permute.xlu0 %768  ;;  %v372_v12 = vpack.c.bf16 %v334_v3, %v334_v3 }
 0x11d   :  { %v309_v1 = vsel %vm308_vm6, %v303_v34, %v760_v57  ;;  %v771_v30 = vunpack.i.h.bf16 %v769_v2  ;;  %v770_v33 = vunpack.i.l.bf16 %v769_v2  ;;  %v746_v34 = vunpack.i.h.bf16 %v1001_v40 }
 0x11e   :  { %v367_v7 = vpack.c.bf16 %v309_v1, %v284_v63  ;;  %420 = vmatprep.subr.bf16.mxu0 %v368_v62  ;;  %v400_v26 = vsel %vm398_vm8, %v372_v12, 0  ;;  %v741_v1 = vunpack.i.h.bf16 %v980_v19  ;;  %vm564_vm6 = vcmask 523264  }
 0x11f   :  { %v139_v49 = vsel %vm138_vm9, %v770_v33, %v771_v30  ;;  %v220_v40 = vsel %vm217_vm3, %v736_v29, %v746_v34 }
 0x120   :  { %v1022_v10 = vpop.permute.xlu1 %331  ;;  %421 = vmatpush1.bf16.msra.mxu0 %v367_v7  ;;  %v779_v14 = vpop.permute.xlu0 %778  ;;  %v146_v61 = vsel %vm145_vm12, %v122_v53, %v139_v49 }
 0x121   :  { %v335_v13 = vsel %vm333_vm7, %v766_v59, %v1022_v10  ;;  %v781_v18 = vunpack.i.h.bf16 %v779_v14  ;;  %v780_v23 = vunpack.i.l.bf16 %v779_v14  ;;  %vm613_vm7 = vcmask 257024  }
 0x122   :  { %v373_v17 = vpack.c.bf16 %v335_v13, %v335_v13 }
 0x123   :  { %v171_v45 = vsel %vm170_vm10, %v780_v23, %v781_v18 }
 0x124   :  { %v774_v25 = vpop.permute.xlu1 %773  ;;  %650 = vmatprep.subr.msk.bf16.mxu0 %vm398_vm8, %v373_v17  ;;  %v789_v37 = vpop.permute.xlu0 %788  ;;  %v177_v54 = vsel %vm145_vm12, %v158_v5, %v171_v45 }
 0x125   :  { %423 = vmatpush1.bf16.msra.mxu0 %v400_v26  ;;  %v776_v41 = vunpack.i.h.bf16 %v774_v25  ;;  %v775_v42 = vunpack.i.l.bf16 %v774_v25  ;;  %v791_v62 = vunpack.i.h.bf16 %v789_v37  ;;  %v790_v4 = vunpack.i.l.bf16 %v789_v37 }
 0x126   :  { %671 = vmatprep.subr.bf16.mxu0 %v850_v44  ;;  %v354_v6 = vpack.c.bf16 %v177_v54, %v146_v61 }
 0x127   :  { %v140_v50 = vsel %vm138_vm9, %v771_v30, %v775_v42  ;;  %v141_v51 = vsel %vm138_vm9, %v775_v42, %v776_v41  ;;  %v202_v13 = vsel %vm201_vm15, %v790_v4, %v791_v62  ;;  %vm631_vm9 = vcmask 785408  }
 0x128   :  { %v784_v15 = vpop.permute.xlu1 %783  ;;  %651 = vmatmul.mubr.msk.bf16.vlgmr.msra.gmra.mrb[0].mxu0 %vm394_vm11, %v1031_v38  ;;  %v799_v48 = vpop.permute.xlu0 %798 }
 0x129   :  { %v786_v46 = vunpack.i.h.bf16 %v784_v15  ;;  %v785_v47 = vunpack.i.l.bf16 %v784_v15  ;;  %681 = vmatprep.mubr.msk.bf16.mxu0 %vm851_vm13, %v850_v44  ;;  %v801_v57 = vunpack.i.h.bf16 %v799_v48  ;;  %v800_v58 = vunpack.i.l.bf16 %v799_v48 }
 0x12b   :  { %v172_v59 = vsel %vm170_vm10, %v781_v18, %v785_v47  ;;  %v173_v8 = vsel %vm170_vm10, %v785_v47, %v786_v46  ;;  %v233_v2 = vsel %vm232_vm14, %v800_v58, %v801_v57  ;;  %v189_v18 = vsel %vm186_vm2, %v731_v22, %v741_v1 }
 0x12c   :  { %v794_v9 = vpop.permute.xlu1 %793  ;;  %v355_v60 = vpack.c.bf16 %v172_v59, %v140_v50  ;;  %v356_v35 = vpack.c.bf16 %v173_v8, %v141_v51  ;;  %v809_v63 = vpop.permute.xlu0 %808  ;;  %v239_v26 = vsel %vm145_vm12, %v220_v40, %v233_v2  ;;  %v208_v41 = vsel %vm145_vm12, %v189_v18, %v202_v13 }
 0x12d   :  { %v796_v3 = vunpack.i.h.bf16 %v794_v9  ;;  %v795_v7 = vunpack.i.l.bf16 %v794_v9  ;;  %v811_v23 = vunpack.i.h.bf16 %v809_v63  ;;  %v810_v25 = vunpack.i.l.bf16 %v809_v63 }
 0x12e   :  { %455 = vmatprep.subr.bf16.mxu1 %v355_v60  ;;  %672 = vmatpush3.bf16.msra.mxu0 %v356_v35  ;;  %v359_v45 = vpack.c.bf16 %v239_v26, %v208_v41  ;;  %vm320_vm2 = vcmask 113664  }
 0x12f   :  { %456 = vmatpush1.bf16.msra.mxu1 %v354_v6  ;;  %673 = vmatprep.subr.bf16.mxu0 %v850_v44  ;;  %v204_v28 = vsel %vm201_vm15, %v795_v7, %v796_v3  ;;  %v203_v27 = vsel %vm201_vm15, %v791_v62, %v795_v7  ;;  %v246_v15 = vsel %vm145_vm12, %v810_v25, %v811_v23 }
 0x130   :  { %v804_v12 = vpop.permute.xlu1 %803  ;;  %v245_v19 = vpop.permute.xlu0 %244  ;;  %v251_v47 = vsel %vm145_vm12, %v932_v36, %v810_v25 }
 0x131   :  { %v806_v14 = vunpack.i.h.bf16 %v804_v12  ;;  %v805_v17 = vunpack.i.l.bf16 %v804_v12  ;;  %v247_v51 = vsel %vm145_vm12, %v811_v23, %v245_v19 }
 0x133   :  { %v235_v30 = vsel %vm232_vm14, %v805_v17, %v806_v14  ;;  %v234_v29 = vsel %vm232_vm14, %v801_v57, %v805_v17  ;;  %v543_v17 = vrot.slane %v920_v21, %v916_v16 }
 0x134   :  { %v361_v33 = vpack.c.bf16 %v235_v30, %v204_v28  ;;  %v814_v37 = vpop.permute.xlu1 %813  ;;  %v360_v39 = vpack.c.bf16 %v234_v29, %v203_v27  ;;  %v819_v42 = vpop.permute.xlu0 %818 }
 0x135   :  { %v816_v11 = vunpack.i.h.bf16 %v814_v37  ;;  %v815_v22 = vunpack.i.l.bf16 %v814_v37  ;;  %v821_v58 = vunpack.i.h.bf16 %v819_v42  ;;  %v820_v59 = vunpack.i.l.bf16 %v819_v42 }
 0x136   :  { %457 = vmatprep.subr.bf16.mxu1 %v360_v39  ;;  %674 = vmatpush3.bf16.msra.mxu0 %v361_v33 }
 0x137   :  { %458 = vmatpush1.bf16.msra.mxu1 %v359_v45  ;;  %v271_v46 = vsel %vm270_vm0, %v815_v22, %v816_v11  ;;  %v276_v48 = vsel %vm145_vm12, %v751_v32, %v815_v22  ;;  %675 = vmatprep.subr.bf16.mxu0 %v850_v44  ;;  %v296_v35 = vsel %vm295_vm1, %v820_v59, %v821_v58 }
 0x138   :  { %v269_v49 = vpop.permute.xlu1 %268  ;;  %v365_v5 = vpack.c.bf16 %v271_v46, %v246_v15  ;;  %v364_v50 = vpack.c.bf16 %v276_v48, %v251_v47  ;;  %v294_v54 = vpop.permute.xlu0 %293  ;;  %v301_v34 = vsel %vm145_vm12, %v756_v52, %v820_v59 }
 0x139   :  { %v272_v53 = vsel %vm270_vm0, %v816_v11, %v269_v49  ;;  %v297_v3 = vsel %vm295_vm1, %v821_v58, %v294_v54 }
 0x13a   :  { %v366_v57 = vpack.c.bf16 %v272_v53, %v247_v51  ;;  %459 = vmatprep.subr.bf16.mxu1 %v365_v5 }
 0x13b   :  { %460 = vmatpush1.bf16.msra.mxu1 %v364_v50 }
 0x13c   :  { %v824_v36 = vpop.permute.xlu1 %823  ;;  %676 = vmatpush3.bf16.msra.mxu0 %v366_v57  ;;  %v829_v8 = vpop.permute.xlu0 %828 }
 0x13d   :  { %v826_v31 = vunpack.i.h.bf16 %v824_v36  ;;  %v825_v32 = vunpack.i.l.bf16 %v824_v36  ;;  %677 = vmatprep.subr.bf16.mxu0 %v850_v44  ;;  %v831_v9 = vunpack.i.h.bf16 %v829_v8  ;;  %v830_v60 = vunpack.i.l.bf16 %v829_v8 }
 0x13f   :  { %v321_v61 = vsel %vm320_vm2, %v825_v32, %v826_v31  ;;  %v326_v62 = vsel %vm145_vm12, %v761_v56, %v825_v32  ;;  %v346_v1 = vsel %vm345_vm4, %v830_v60, %v831_v9  ;;  %v351_v2 = vsel %vm145_vm12, %v1022_v10, %v830_v60 }
 0x140   :  { %v319_v4 = vpop.permute.xlu1 %318  ;;  %v370_v63 = vpack.c.bf16 %v321_v61, %v296_v35  ;;  %v369_v6 = vpack.c.bf16 %v326_v62, %v301_v34  ;;  %v375_v43 = vpack.c.bf16 %v346_v1, %v346_v1  ;;  %v374_v52 = vpack.c.bf16 %v351_v2, %v351_v2 }
 0x141   :  { %v322_v7 = vsel %vm320_vm2, %v826_v31, %v319_v4 }
 0x142   :  { %v371_v12 = vpack.c.bf16 %v322_v7, %v297_v3  ;;  %461 = vmatprep.subr.bf16.mxu1 %v370_v63  ;;  %v406_v10 = vsel %vm398_vm8, %v374_v52, 0 }
 0x143   :  { %462 = vmatpush1.bf16.msra.mxu1 %v369_v6 }
 0x144   :  { %v344_v55 = vpop.permute.xlu1 %343  ;;  %652 = vmatprep.subr.msk.bf16.mxu1 %vm398_vm8, %v375_v43  ;;  %678 = vmatpush3.bf16.msra.mxu0 %v371_v12 }
 0x145   :  { %v347_v56 = vsel %vm345_vm4, %v831_v9, %v344_v55  ;;  %679 = vmatprep.subr.bf16.mxu0 %v850_v44 }
 0x146   :  { %v376_v40 = vpack.c.bf16 %v347_v56, %v347_v56 }
 0x147   :  { %464 = vmatpush1.bf16.msra.mxu1 %v406_v10 }
 0x148   :  { %v412_v13 = vsel %vm398_vm8, %v376_v40, 0  ;;  %v378_v0 = vpop.permute.xlu1 %377 }
 0x149   :  { %680 = vmatpush3.bf16.msra.mxu0 %v412_v13 }
 0x14a   :  { %653 = vmatmul.mubr.msk.bf16.vlgmr.msra.gmra.mrb[0].mxu1 %vm394_vm11, %v1031_v38 }
 0x14c   :  { %682 = vmatmul.mubr.msk.bf16.vlgmr.msra.gmra.mrb[4].mxu0 %vm394_vm11, %v1031_v38  ;;  %v539_v38 = vrot.slane %v918_v20, %v916_v16  ;;  %v382_v29 = vpop.permute.xlu1 %381  ;;  %v388_v20 = vsel %vm145_vm12, %v922_v24, %v378_v0 }
 0x14d   :  { %v392_v44 = vpop.permute.xlu0 %391  ;;  %v547_v37 = vrot.slane %v388_v20, %v916_v16 }
 0x151   :  { %v380_v33 = vpop.permute.xlu0 %379 }
 0x152   :  { %v384_v21 = vsel %vm145_vm12, %v380_v33, %v382_v29  ;;  %v383_v39 = vsel %vm145_vm12, %v378_v0, %v380_v33 }
 0x153   :  { %v555_v22 = vrot.slane %v384_v21, %v916_v16  ;;  %v551_v45 = vrot.slane %v383_v39, %v916_v16 }
 0x1fb   :  { %v448_v14 = vpop.f32.mrb[0].mxu0 }
 0x1fc   :  { %v449_v19 = vadd.f32 %v448_v14, %v392_v44  ;;  %v450_v18 = vpop.f32.mrb[1].mxu0 }
 0x1fd   :  { %v451_v23 = vadd.f32 %v450_v18, %v392_v44  ;;  %v452_v25 = vpop.f32.mrb[2].mxu0 }
 0x1fe   :  { %v556_v26 = vmul.f32 %v539_v38, %v449_v19  ;;  %v453_v28 = vpop.f32.mrb[3].mxu0 }
 0x1ff   :  { %v557_v30 = vmul.f32 %v543_v17, %v451_v23 }
 0x201   :  { %v661_v27 = vpack.c.bf16 %v557_v30, %v556_v26  ;;  %v561_v48 = vadd.f32 %v557_v30, %v556_v26 }
 0x203   :  { %612 = vst [vmem:[%s1160_s6 + $0x4] sm:$0xff] %v661_v27 }
 0x21d   :  { %v489_v41 = vpop.f32.mrb[0].mxu1 }
 0x21e   :  { %v490_v11 = vadd.f32 %v489_v41, %v392_v44  ;;  %v491_v42 = vpop.f32.mrb[1].mxu1 }
 0x21f   :  { %v492_v15 = vadd.f32 %v491_v42, %v392_v44  ;;  %v493_v46 = vpop.f32.mrb[2].mxu1  ;;  %v530_v47 = vpop.f32.mrb[4].mxu0 }
 0x220   :  { %v558_v49 = vmul.f32 %v547_v37, %v490_v11  ;;  %v531_v24 = vadd.f32 %v530_v47, %v392_v44  ;;  %v494_v5 = vpop.f32.mrb[3].mxu1  ;;  %v683_v50 = vpop.f32.mrb[5].mxu0 }
 0x221   :  { %v559_v51 = vmul.f32 %v551_v45, %v492_v15  ;;  %v533_v53 = vpop.f32.mrb[6].mxu0 }
 0x222   :  { %v662_v54 = vpack.c.bf16 %v558_v49, %v558_v49  ;;  %v560_v57 = vmul.f32 %v555_v22, %v531_v24  ;;  %v684_v58 = vpop.f32.mrb[7].mxu0  ;;  %v562_v59 = vadd.f32 %v561_v48, %v558_v49 }
 0x223   :  { %v663_v32 = vpack.c.bf16 %v559_v51, %v558_v49 }
 0x224   :  { %v563_v36 = vadd.f32 %v562_v59, %v559_v51  ;;  %v565_v31 = vsel %vm564_vm6, %v560_v57, 0.0  ;;  %614 = vst.msk [vmem:[%s1160_s6 + $0xc] sm:$0xf] %vm613_vm7, %v662_v54  ;;  %v664_v44 = vpack.c.bf16 %v560_v57, %v560_v57 }
 0x226   :  { %v566_v16 = vadd.f32 %v565_v31, %v563_v36 }
 0x228   :  { %567 = vadd.xlane.f32.xlu0 %v566_v16 }
 0x23e   :  { %623 = vrot.lane.b32.xlu0 %v663_v32, %s852_s21 }
 0x2b5   :  { %v568_v8 = vpop.xlane.xlu0 %567 }
 0x2b6   :  { %v569_v9 = vmul.f32 0.001953125, %v568_v8  ;;  %592 = vst.msk [vmem:[%s1161_s7] sm:$0xff] %vm217_vm3, %v568_v8 }
 0x2b8   :  { %v570_v60 = vsub.f32 %v556_v26, %v569_v9  ;;  %v571_v35 = vsub.f32 %v557_v30, %v569_v9  ;;  %v572_v61 = vsub.f32 %v558_v49, %v569_v9  ;;  %v573_v34 = vsub.f32 %v559_v51, %v569_v9 }
 0x2b9   :  { %v574_v62 = vsub.f32 %v560_v57, %v569_v9 }
 0x2ba   :  { %v575_v4 = vmul.f32 %v570_v60, %v539_v38  ;;  %v576_v63 = vmul.f32 %v571_v35, %v543_v17  ;;  %v577_v6 = vmul.f32 %v572_v61, %v547_v37  ;;  %v578_v2 = vmul.f32 %v573_v34, %v551_v45  ;;  %v624_v38 = vpop.permute.xlu0 %623 }
 0x2bb   :  { %v579_v1 = vmul.f32 %v574_v62, %v555_v22  ;;  %v627_v19 = vrot.slane %v624_v38, 4 }
 0x2bc   :  { %v580_v3 = vmul.f32 %v575_v4, %v575_v4  ;;  %v581_v7 = vmul.f32 %v576_v63, %v576_v63  ;;  %v582_v12 = vmul.f32 %v577_v6, %v577_v6  ;;  %v583_v55 = vmul.f32 %v578_v2, %v578_v2 }
 0x2bd   :  { %v584_v52 = vmul.f32 %v579_v1, %v579_v1 }
 0x2be   :  { %v585_v43 = vadd.f32 %v581_v7, %v580_v3 }
 0x2bf   :  { %v588_v10 = vsel %vm564_vm6, %v584_v52, 0.0 }
 0x2c0   :  { %v586_v56 = vadd.f32 %v585_v43, %v582_v12 }
 0x2c2   :  { %v587_v40 = vadd.f32 %v586_v56, %v583_v55 }
 0x2c4   :  { %v589_v13 = vadd.f32 %v588_v10, %v587_v40 }
 0x2c6   :  { %590 = vadd.xlane.f32.xlu1 %v589_v13 }
 0x2d7   :  { %625 = vrot.lane.b32.xlu1 %v664_v44, %s852_s21 }
 0x353   :  { %v591_v14 = vpop.xlane.xlu1 %590 }
 0x354   :  { %593 = vst.msk [vmem:[%s1162_s8] sm:$0xff] %vm217_vm3, %v591_v14 }
 0x357   :  { %v626_v17 = vpop.permute.xlu1 %625 }
 0x358   :  { %v628_v18 = vrot.slane %v626_v17, 4  ;;  %660 = vst.msk [vmem:[%s1160_s6 + $0x1c] sm:$0xf] %vm613_vm7, %v626_v17 }
 0x35a   :  { %v630_v23 = vsel %vm398_vm8, %v627_v19, %v628_v18 }
 0x35b   :  { %v632_v25 = vsel %vm631_vm9, %v624_v38, %v630_v23 }
 0x35c   :  { %659 = vst [vmem:[%s1160_s6 + $0x14] sm:$0xff] %v632_v25 }

// kernel: conv_block_forward.3
= control target key start
LH: loop header
LB: loop body
LE: loop exit
PB: predicated region body
PF: predicated region fallthrough
CT: control target
= control target key end

     0   :  { %s877_s25 = smov 127   ;;  %s878_s26 = smov 111   ;;  %vm157_vm0 = vcmask 1043456   ;;  %v887_v19 = vmov 0   ;;  %vm186_vm1 = vcmask 1039360   ;;  %vm216_vm2 = vcmask 908288   ;;  %s1234_s0 = inlined_call_operand.vmem [shape: bf16[2,4,512], index: 0, kind: input, shape index: {}]   ;;  %s1235_s2 = inlined_call_operand.vmem [shape: f32[8,1], index: 2, kind: input, shape index: {}]   ;;  %s1236_s3 = inlined_call_operand.vmem [shape: f32[1,512], index: 3, kind: input, shape index: {}]   ;;  %s1237_s1 = inlined_call_operand.vmem [shape: bf16[8,36], index: 1, kind: input, shape index: {}]   ;;  %s1238_s4 = inlined_call_operand.vmem [shape: bf16[2,8,512], index: 4, kind: output, shape index: {0}]   ;;  %s1239_s5 = inlined_call_operand.vmem [shape: f32[1,8,1], index: 5, kind: output, shape index: {1}]   ;;  %s1240_s6 = inlined_call_operand.vmem [shape: f32[1,8,1], index: 6, kind: output, shape index: {2}]  }
   0x1   :  { %v22_v0 = vld [vmem:[%s1234_s0 + $0x8] sm:$0xff]  ;;  %v21_v1 = vld [vmem:[%s1234_s0] sm:$0xff]  ;;  %s879_s27 = smov 110   ;;  %s880_s28 = smov 109   ;;  %471 = vmatprep.mubr.bf16.mxu0 %v887_v19  ;;  %512 = vmatprep.mubr.bf16.mxu1 %v887_v19  ;;  %vm250_vm3 = vcmask 900096   ;;  %vm280_vm4 = vcmask 891904  }
   0x2   :  { %v25_v2 = vunpack.c.l.bf16 %v22_v0  ;;  %v935_v3 = vunpack.c.h.bf16 %v22_v0  ;;  %v937_v4 = vunpack.c.l.bf16 %v21_v1  ;;  %v940_v6 = vunpack.c.h.bf16 %v21_v1  ;;  %s881_s0 = smov 1   ;;  %s882_s29 = smov 18   ;;  %876 = vset.pattern.permute.xlu0 %v887_v19  ;;  %619 = vst [vmem:[%s1238_s4] sm:$0xf] %v887_v19  ;;  %620 = vst [vmem:[%s1238_s4 + $0x10] sm:$0xf] %v887_v19 }
   0x3   :  { %s883_s30 = smov 19   ;;  %s884_s7 = smov 17   ;;  %vm136_vm5 = vcmask 7168   ;;  %vm78_vm6 = vcmask 146432   ;;  %vm42_vm7 = vcmask 154624   ;;  %vm105_vm8 = vcmask 138240  }
   0x4   :  { %v721_v5 = vpack.i.bf16 %v935_v3, %v25_v2  ;;  %v32_v7 = vcombine.high %v937_v4, %v937_v4  ;;  %v33_v9 = vcombine.high %v940_v6, %v940_v6  ;;  %v766_v11 = vpack.i.bf16 %v940_v6, %v937_v4  ;;  %s885_s8 = smov 50   ;;  %s886_s9 = smov 33  }
   0x5   :  { %v52_v12 = vcombine.high %v935_v3, %v935_v3  ;;  %v51_v13 = vcombine.high %v25_v2, %v25_v2  ;;  %v161_v16 = vrot.slane %v25_v2, 4  ;;  %v162_v17 = vrot.slane %v935_v3, 4  ;;  %s888_s10 = smov 51   ;;  %s889_s11 = smov 49  }
   0x6   :  { %722 = vrot.lane.b32.xlu0 %v721_v5, %s877_s25  ;;  %732 = vrot.lane.b32.xlu1 %v721_v5, %s878_s26  ;;  %v746_v8 = vpack.i.bf16 %v940_v6, %v32_v7  ;;  %v756_v10 = vpack.i.bf16 %v33_v9, %v937_v4  ;;  %s890_s12 = smov 32   ;;  %v155_v55 = vrot.slane %v937_v4, 4  ;;  %v156_v56 = vrot.slane %v940_v6, 4 }
   0x7   :  { %v806_v14 = vpack.i.bf16 %v52_v12, %v935_v3  ;;  %v801_v15 = vpack.i.bf16 %v51_v13, %v25_v2  ;;  %v163_v18 = vsel %vm157_vm0, %v161_v16, %v162_v17  ;;  %vm91_vm9 = vcmask 408576  }
   0x8   :  { %v166_v20 = vcombine.high %v163_v18, %v163_v18  ;;  %v990_v2 = vsel %vm157_vm0, %v155_v55, %v156_v56  ;;  %vm149_vm10 = vcmask 269312   ;;  %vm68_vm11 = vcmask 261120  }
   0x9   :  { %vm423_vm12 = vcmask 1041408   ;;  %vm61_vm13 = vcmask 416768   ;;  %vm120_vm14 = vcmask 400384   ;;  %vm419_vm15 = vcmask 293888  }
   0xa   :  { %727 = vrot.lane.b32.xlu0 %v721_v5, %s879_s27  ;;  %737 = vrot.lane.b32.xlu1 %v721_v5, %s880_s28  ;;  %v841_v21 = vpack.i.bf16 %v166_v20, %v163_v18  ;;  %v164_v20 = vcombine.high %v990_v2, %v990_v2 }
   0xe   :  { %747 = vrot.lane.b32.xlu1 %v746_v8, %s881_s0  ;;  %742 = vrot.lane.b32.xlu0 %v746_v8, %s882_s29 }
  0x12   :  { %757 = vrot.lane.b32.xlu1 %v756_v10, %s881_s0  ;;  %752 = vrot.lane.b32.xlu0 %v756_v10, %s882_s29 }
  0x16   :  { %767 = vrot.lane.b32.xlu1 %v766_v11, %s878_s26  ;;  %762 = vrot.lane.b32.xlu0 %v766_v11, %s877_s25 }
  0x1a   :  { %777 = vrot.lane.b32.xlu1 %v746_v8, %s883_s30  ;;  %772 = vrot.lane.b32.xlu0 %v766_v11, %s879_s27 }
  0x1e   :  { %787 = vrot.lane.b32.xlu1 %v756_v10, %s883_s30  ;;  %782 = vrot.lane.b32.xlu0 %v746_v8, %s884_s7 }
  0x22   :  { %797 = vrot.lane.b32.xlu1 %v766_v11, %s880_s28  ;;  %792 = vrot.lane.b32.xlu0 %v756_v10, %s884_s7  ;;  %s893_s28 = smov 96  }
  0x26   :  { %807 = vrot.lane.b32.xlu1 %v806_v14, %s885_s8  ;;  %802 = vrot.lane.b32.xlu0 %v801_v15, %s885_s8 }
  0x2a   :  { %817 = vrot.lane.b32.xlu1 %v806_v14, %s886_s9  ;;  %812 = vrot.lane.b32.xlu0 %v801_v15, %s886_s9 }
  0x2e   :  { %827 = vrot.lane.b32.xlu1 %v806_v14, %s888_s10  ;;  %822 = vrot.lane.b32.xlu0 %v801_v15, %s888_s10 }
  0x32   :  { %837 = vrot.lane.b32.xlu1 %v806_v14, %s889_s11  ;;  %832 = vrot.lane.b32.xlu0 %v801_v15, %s889_s11 }
  0x36   :  { %842 = vrot.lane.b32.xlu0 %v841_v21, %s890_s12 }
  0x78   :  { %v723_v22 = vpop.permute.xlu0 %722  ;;  %v733_v23 = vpop.permute.xlu1 %732 }
  0x79   :  { %v725_v24 = vunpack.i.h.bf16 %v723_v22  ;;  %v724_v25 = vunpack.i.l.bf16 %v723_v22  ;;  %v735_v26 = vunpack.i.h.bf16 %v733_v23  ;;  %v734_v27 = vunpack.i.l.bf16 %v733_v23 }
  0x7b   :  { %v194_v28 = vrot.slane %v725_v24, 4  ;;  %v193_v29 = vrot.slane %v724_v25, 4  ;;  %v225_v30 = vrot.slane %v735_v26, 4  ;;  %v224_v31 = vrot.slane %v734_v27, 4 }
  0x7c   :  { %v728_v32 = vpop.permute.xlu0 %727  ;;  %v738_v33 = vpop.permute.xlu1 %737 }
  0x7d   :  { %v195_v34 = vsel %vm157_vm0, %v193_v29, %v194_v28  ;;  %v730_v35 = vunpack.i.h.bf16 %v728_v32  ;;  %v729_v36 = vunpack.i.l.bf16 %v728_v32  ;;  %v740_v37 = vunpack.i.h.bf16 %v738_v33 }
  0x7e   :  { %v739_v38 = vunpack.i.l.bf16 %v738_v33  ;;  %v196_v39 = vsel %vm186_vm1, %v195_v34, %v725_v24  ;;  %v226_v40 = vsel %vm157_vm0, %v224_v31, %v225_v30  ;;  %v866_v15 = vpack.i.bf16 %v225_v30, %v162_v17 }
  0x7f   :  { %v258_v41 = vrot.slane %v730_v35, 4  ;;  %v257_v42 = vrot.slane %v729_v36, 4  ;;  %v198_v43 = vcombine.high %v196_v39, %v196_v39  ;;  %v964_v44 = vrot.slane %v740_v37, 4 }
  0x80   :  { %v288_v45 = vrot.slane %v739_v38, 4  ;;  %v966_v46 = vpop.permute.xlu1 %747  ;;  %v968_v47 = vpop.permute.xlu0 %742  ;;  %v227_v52 = vsel %vm216_vm2, %v226_v40, %v735_v26 }
  0x81   :  { %v259_v48 = vsel %vm157_vm0, %v257_v42, %v258_v41  ;;  %v846_v49 = vpack.i.bf16 %v198_v43, %v196_v39  ;;  %v851_v61 = vpack.i.bf16 %v258_v41, %v194_v28  ;;  %v230_v62 = vcombine.high %v227_v52, %v227_v52 }
  0x82   :  { %v290_v50 = vsel %vm157_vm0, %v288_v45, %v964_v44  ;;  %v260_v51 = vsel %vm250_vm3, %v259_v48, %v730_v35  ;;  %v750_v63 = vunpack.i.h.bf16 %v966_v46  ;;  %v749_v0 = vunpack.i.l.bf16 %v966_v46 }
  0x83   :  { %847 = vrot.lane.b32.xlu0 %v846_v49, %s890_s12  ;;  %v262_v53 = vcombine.high %v260_v51, %v260_v51  ;;  %v291_v54 = vsel %vm280_vm4, %v290_v50, %v740_v37  ;;  %v745_v4 = vunpack.i.h.bf16 %v968_v47  ;;  %v744_v5 = vunpack.i.l.bf16 %v968_v47  ;;  %v28_v50 = vld [vmem:[%s1235_s2] sm:$0xff] }
  0x84   :  { %v294_v57 = vcombine.high %v291_v54, %v291_v54  ;;  %v979_v58 = vpop.permute.xlu1 %757  ;;  %v981_v59 = vpop.permute.xlu0 %752  ;;  %v861_v11 = vpack.i.bf16 %v230_v62, %v227_v52  ;;  %v138_v18 = vsel %vm136_vm5, %v749_v0, %v750_v63 }
  0x85   :  { %v856_v60 = vpack.i.bf16 %v262_v53, %v260_v51  ;;  %v759_v7 = vunpack.i.l.bf16 %v979_v58  ;;  %v754_v8 = vunpack.i.l.bf16 %v981_v59  ;;  %v760_v21 = vunpack.i.h.bf16 %v979_v58 }
  0x86   :  { %v871_v1 = vpack.i.bf16 %v294_v57, %v291_v54  ;;  %v80_v28 = vsel %vm78_vm6, %v744_v5, %v745_v4  ;;  %v755_v33 = vunpack.i.h.bf16 %v981_v59  ;;  %v320_v36 = vrot.slane %v138_v18, 4 }
  0x87   :  { %857 = vrot.lane.b32.xlu1 %v856_v60, %s890_s12  ;;  %852 = vrot.lane.b32.xlu0 %v851_v61, %s890_s12  ;;  %v1011_v3 = vsel %vm136_vm5, %v759_v7, %v749_v0  ;;  %v1014_v17 = vsel %vm78_vm6, %v754_v8, %v744_v5  ;;  %v309_v40 = vrot.slane %v80_v28, 4  ;;  %v387_v61 = vlaneseq }
  0x88   :  { %v768_v9 = vpop.permute.xlu1 %767  ;;  %v763_v10 = vpop.permute.xlu0 %762  ;;  %v319_v41 = vrot.slane %v1011_v3, 4  ;;  %v308_v42 = vrot.slane %v1014_v17, 4 }
  0x89   :  { %v770_v12 = vunpack.i.h.bf16 %v768_v9  ;;  %v769_v13 = vunpack.i.l.bf16 %v768_v9  ;;  %v765_v14 = vunpack.i.h.bf16 %v763_v10  ;;  %v764_v16 = vunpack.i.l.bf16 %v763_v10 }
  0x8a   :  { %v1067_v3 = vshrl.u32 %v387_v61, 7 }
  0x8b   :  { %862 = vrot.lane.b32.xlu1 %v861_v11, %s890_s12  ;;  %872 = vrot.lane.b32.xlu0 %v871_v1, %s890_s12  ;;  %v1006_v22 = vrot.slane %v770_v12, 4  ;;  %v213_v23 = vrot.slane %v769_v13, 4  ;;  %v1008_v24 = vrot.slane %v765_v14, 4  ;;  %v183_v25 = vrot.slane %v764_v16, 4 }
  0x8c   :  { %v1016_v26 = vpop.permute.xlu1 %777  ;;  %v773_v27 = vpop.permute.xlu0 %772 }
  0x8d   :  { %v215_v29 = vsel %vm157_vm0, %v213_v23, %v1006_v22  ;;  %v780_v30 = vunpack.i.h.bf16 %v1016_v26  ;;  %v779_v31 = vunpack.i.l.bf16 %v1016_v26  ;;  %v775_v32 = vunpack.i.h.bf16 %v773_v27 }
  0x8e   :  { %v185_v34 = vsel %vm157_vm0, %v183_v25, %v1008_v24  ;;  %v774_v35 = vunpack.i.l.bf16 %v773_v27  ;;  %v217_v37 = vsel %vm216_vm2, %v215_v29, %v770_v12  ;;  %v1076_v29 = vld [vmem:[%s1236_s3] sm:$0xf]  ;;  %vm621_vm2 = vcmask 1043712  }
  0x8f   :  { %867 = vrot.lane.b32.xlu1 %v866_v15, %s890_s12  ;;  %v187_v38 = vsel %vm186_vm1, %v185_v34, %v765_v14  ;;  %v1031_v39 = vrot.slane %v775_v32, 4  ;;  %v44_v49 = vsel %vm42_vm7, %v779_v31, %v780_v30  ;;  %416 = vperm.xlu0 %876, %v28_v50   ;;  %v228_v55 = vcombine.high %v217_v37, %v217_v37 }
  0x90   :  { %v247_v43 = vrot.slane %v774_v35, 4  ;;  %v1035_v45 = vpop.permute.xlu1 %787  ;;  %v1037_v48 = vpop.permute.xlu0 %782  ;;  %v197_v51 = vcombine.high %v187_v38, %v187_v38  ;;  %v330_v57 = vrot.slane %v187_v38, 4  ;;  %v352_v5 = vsel %vm157_vm0, %v44_v49, %v309_v40  ;;  %622 = vst.msk [vmem:[%s1238_s4 + $0xc] sm:$0xf] %vm621_vm2, %v887_v19  ;;  %623 = vst.msk [vmem:[%s1238_s4 + $0x1c] sm:$0xf] %vm621_vm2, %v887_v19 }
  0x91   :  { %v789_v52 = vunpack.i.l.bf16 %v1035_v45  ;;  %v785_v53 = vunpack.i.h.bf16 %v1037_v48  ;;  %v784_v54 = vunpack.i.l.bf16 %v1037_v48  ;;  %v790_v0 = vunpack.i.h.bf16 %v1035_v45 }
  0x92   :  { %v249_v60 = vsel %vm157_vm0, %v247_v43, %v1031_v39  ;;  %v362_v15 = vsel %vm157_vm0, %v164_v20, %v197_v51  ;;  %v361_v23 = vsel %vm157_vm0, %v990_v2, %v330_v57  ;;  %v389_v35 = vsub.s32 1, %v1067_v3 }
  0x93   :  { %299 = vrot.lane.b32.xlu1 %v964_v44, %s890_s12  ;;  %v251_v62 = vsel %vm250_vm3, %v249_v60, %v775_v32  ;;  %v107_v1 = vsel %vm105_vm8, %v784_v54, %v785_v53  ;;  %v43_v12 = vsel %vm42_vm7, %v789_v52, %v779_v31  ;;  %v45_v59 = vsel %vm42_vm7, %v780_v30, %v790_v0 }
  0x94   :  { %v261_v7 = vcombine.high %v251_v62, %v251_v62  ;;  %v341_v8 = vrot.slane %v251_v62, 4  ;;  %v798_v9 = vpop.permute.xlu1 %797  ;;  %v793_v10 = vpop.permute.xlu0 %792  ;;  %v357_v11 = vsel %vm157_vm0, %v107_v1, %v320_v36  ;;  %v351_v28 = vsel %vm157_vm0, %v43_v12, %v308_v42 }
  0x95   :  { %v800_v44 = vunpack.i.h.bf16 %v798_v9  ;;  %v799_v13 = vunpack.i.l.bf16 %v798_v9  ;;  %v794_v14 = vunpack.i.l.bf16 %v793_v10  ;;  %v372_v16 = vpack.c.bf16 %v357_v11, %v352_v5 }
  0x96   :  { %v367_v18 = vsel %vm157_vm0, %v228_v55, %v261_v7  ;;  %v795_v20 = vunpack.i.h.bf16 %v793_v10  ;;  %v366_v34 = vsel %vm157_vm0, %v217_v37, %v341_v8  ;;  %v1085_v50 = vrot.slane %v1076_v29, %v389_v35 }
  0x97   :  { %v1069_v17 = vrot.slane %v800_v44, 4  ;;  %v277_v25 = vrot.slane %v799_v13, 4  ;;  %v106_v27 = vsel %vm105_vm8, %v794_v14, %v784_v54  ;;  %439 = vmatprep.subr.bf16.mxu0 %v372_v16  ;;  %v377_v42 = vpack.c.bf16 %v367_v18, %v362_v15 }
  0x98   :  { %v808_v31 = vpop.permute.xlu1 %807  ;;  %v803_v32 = vpop.permute.xlu0 %802  ;;  %v356_v2 = vsel %vm157_vm0, %v106_v27, %v319_v41  ;;  %v139_v37 = vsel %vm136_vm5, %v750_v63, %v760_v21  ;;  %v81_v54 = vsel %vm78_vm6, %v745_v4, %v755_v33  ;;  %v376_v58 = vpack.c.bf16 %v366_v34, %v361_v23  ;;  %402 = vrot.lane.b32.xlu1 %v1085_v50, %s890_s12  ;;  %v1127_v34 = vld [vmem:[%s1237_s1] sm:$0xf] }
  0x99   :  { %v279_v36 = vsel %vm157_vm0, %v277_v25, %v1069_v17  ;;  %v810_v38 = vunpack.i.h.bf16 %v808_v31  ;;  %v805_v40 = vunpack.i.h.bf16 %v803_v32  ;;  %v804_v45 = vunpack.i.l.bf16 %v803_v32 }
  0x9a   :  { %v281_v43 = vsel %vm280_vm4, %v279_v36, %v800_v44  ;;  %v371_v49 = vpack.c.bf16 %v356_v2, %v351_v28  ;;  %v809_v51 = vunpack.i.l.bf16 %v808_v31  ;;  %v108_v4 = vsel %vm105_vm8, %v785_v53, %v795_v20 }
  0x9b   :  { %v292_v41 = vcombine.high %v281_v43, %v281_v43  ;;  %v381_v52 = vpack.c.bf16 %v281_v43, %v281_v43  ;;  %v92_v55 = vsel %vm91_vm9, %v804_v45, %v805_v40  ;;  %v393_v48 = vsub.s32 2, %v1067_v3 }
  0x9c   :  { %v818_v57 = vpop.permute.xlu1 %817  ;;  %v813_v60 = vpop.permute.xlu0 %812  ;;  %440 = vmatpush1.bf16.msra.mxu0 %v371_v49  ;;  %v94_v47 = vsel %vm91_vm9, %v809_v51, %v810_v38  ;;  %v93_v1 = vsel %vm91_vm9, %v805_v40, %v809_v51  ;;  %v96_v5 = vsel %vm68_vm11, %v81_v54, %v92_v55  ;;  %v397_v15 = vsub.s32 3, %v1067_v3 }
  0x9d   :  { %v820_v46 = vunpack.i.h.bf16 %v818_v57  ;;  %v819_v63 = vunpack.i.l.bf16 %v818_v57  ;;  %v815_v21 = vunpack.i.h.bf16 %v813_v60  ;;  %v814_v61 = vunpack.i.l.bf16 %v813_v60  ;;  %441 = vmatprep.subr.bf16.mxu0 %v377_v42 }
  0x9e   :  { %v382_v33 = vpack.c.bf16 %v292_v41, %v292_v41  ;;  %v425_v7 = vsel %vm423_vm12, %v381_v52, 0  ;;  %v312_v44 = vrot.slane %v94_v47, 4  ;;  %v311_v13 = vrot.slane %v93_v1, 4 }
  0x9f   :  { %v150_v62 = vsel %vm149_vm10, %v814_v61, %v815_v21  ;;  %v152_v8 = vsel %vm149_vm10, %v819_v63, %v820_v46  ;;  %v151_v26 = vsel %vm149_vm10, %v815_v21, %v819_v63  ;;  %v1117_v14 = vrot.slane %v1076_v29, %v393_v48 }
  0xa0   :  { %v828_v9 = vpop.permute.xlu1 %827  ;;  %v823_v10 = vpop.permute.xlu0 %822  ;;  %v154_v30 = vsel %vm68_vm11, %v139_v37, %v150_v62  ;;  %442 = vmatpush1.bf16.msra.mxu0 %v376_v58  ;;  %v310_v25 = vrot.slane %v96_v5, 4  ;;  %v323_v27 = vrot.slane %v152_v8, 4  ;;  %v322_v31 = vrot.slane %v151_v26, 4 }
  0xa1   :  { %v830_v53 = vunpack.i.h.bf16 %v828_v9  ;;  %v829_v0 = vunpack.i.l.bf16 %v828_v9  ;;  %v825_v11 = vunpack.i.h.bf16 %v823_v10  ;;  %v824_v12 = vunpack.i.l.bf16 %v823_v10  ;;  %675 = vmatprep.subr.msk.bf16.mxu0 %vm423_vm12, %v382_v33  ;;  %404 = vrot.lane.b32.xlu1 %v1117_v14, %s890_s12 }
  0xa2   :  { %v321_v2 = vrot.slane %v154_v30, 4  ;;  %v891_v42 = vmov 0.0   ;;  %v1135_v49 = vrot.slane %v1076_v29, %v397_v15  ;;  %vm892_vm1 = vmmov 0  }
  0xa3   :  { %v63_v16 = vsel %vm61_vm13, %v825_v11, %v829_v0  ;;  %v64_v18 = vsel %vm61_vm13, %v829_v0, %v830_v53  ;;  %v62_v23 = vsel %vm61_vm13, %v824_v12, %v825_v11  ;;  %vm638_vm3 = vcmask 257024  }
  0xa4   :  { %v838_v28 = vpop.permute.xlu1 %837  ;;  %v833_v20 = vpop.permute.xlu0 %832  ;;  %v69_v32 = vsel %vm68_vm11, %v45_v59, %v62_v23  ;;  %444 = vmatpush1.bf16.msra.mxu0 %v425_v7  ;;  %v354_v43 = vsel %vm157_vm0, %v63_v16, %v311_v13  ;;  %v355_v45 = vsel %vm157_vm0, %v64_v18, %v312_v44  ;;  %406 = vrot.lane.b32.xlu0 %v1135_v49, %s890_s12  ;;  %vm589_vm4 = vcmask 523264  }
  0xa5   :  { %v840_v35 = vunpack.i.h.bf16 %v838_v28  ;;  %v839_v36 = vunpack.i.l.bf16 %v838_v28  ;;  %v835_v38 = vunpack.i.h.bf16 %v833_v20  ;;  %v834_v40 = vunpack.i.l.bf16 %v833_v20  ;;  %694 = vmatprep.subr.bf16.mxu0 %v891_v42 }
  0xa6   :  { %v353_v52 = vsel %vm157_vm0, %v69_v32, %v310_v25  ;;  %vm656_vm6 = vcmask 785408  }
  0xa7   :  { %v122_v37 = vsel %vm120_vm14, %v835_v38, %v839_v36  ;;  %v123_v41 = vsel %vm120_vm14, %v839_v36, %v840_v35  ;;  %v121_v51 = vsel %vm120_vm14, %v834_v40, %v835_v38  ;;  %676 = vmatmul.mubr.msk.bf16.vlgmr.msra.gmra.mrb[0].mxu0 %vm419_vm15, %v1127_v34 }
  0xa8   :  { %v359_v54 = vsel %vm157_vm0, %v122_v37, %v322_v31  ;;  %v127_v55 = vsel %vm68_vm11, %v108_v4, %v121_v51  ;;  %v360_v57 = vsel %vm157_vm0, %v123_v41, %v323_v27  ;;  %700 = vmatprep.mubr.msk.bf16.mxu0 %vm892_vm1, %v891_v42  ;;  %v843_v63 = vpop.permute.xlu0 %842 }
  0xa9   :  { %v374_v29 = vpack.c.bf16 %v359_v54, %v354_v43  ;;  %v358_v60 = vsel %vm157_vm0, %v127_v55, %v321_v2  ;;  %v375_v46 = vpack.c.bf16 %v360_v57, %v355_v45  ;;  %v845_v59 = vunpack.i.h.bf16 %v843_v63 }
  0xaa   :  { %v373_v58 = vpack.c.bf16 %v358_v60, %v353_v52  ;;  %v844_v4 = vunpack.i.l.bf16 %v843_v63 }
  0xab   :  { %480 = vmatprep.subr.bf16.mxu1 %v374_v29  ;;  %695 = vmatpush3.bf16.msra.mxu0 %v375_v46 }
  0xac   :  { %481 = vmatpush1.bf16.msra.mxu1 %v373_v58  ;;  %696 = vmatprep.subr.bf16.mxu0 %v891_v42  ;;  %v173_v9 = vsel %vm68_vm11, %v844_v4, %v845_v59  ;;  %v178_v10 = vsel %vm68_vm11, %v156_v56, %v844_v4 }
  0xf5   :  { %v848_v21 = vpop.permute.xlu0 %847 }
  0xf6   :  { %v850_v61 = vunpack.i.h.bf16 %v848_v21  ;;  %v849_v47 = vunpack.i.l.bf16 %v848_v21 }
  0xf8   :  { %v205_v33 = vsel %vm68_vm11, %v849_v47, %v850_v61  ;;  %v208_v62 = vsel %vm68_vm11, %v1008_v24, %v849_v47 }
  0xf9   :  { %v858_v1 = vpop.permute.xlu1 %857  ;;  %v853_v5 = vpop.permute.xlu0 %852  ;;  %v332_v26 = vrot.slane %v208_v62, 4  ;;  %v333_v30 = vrot.slane %v205_v33, 4 }
  0xfa   :  { %v860_v7 = vunpack.i.h.bf16 %v858_v1  ;;  %v859_v8 = vunpack.i.l.bf16 %v858_v1  ;;  %v855_v0 = vunpack.i.h.bf16 %v853_v5  ;;  %v854_v11 = vunpack.i.l.bf16 %v853_v5 }
  0xfb   :  { %v364_v16 = vsel %vm157_vm0, %v173_v9, %v333_v30  ;;  %v363_v18 = vsel %vm157_vm0, %v178_v10, %v332_v26 }
  0xfc   :  { %v269_v48 = vsel %vm68_vm11, %v859_v8, %v860_v7  ;;  %v272_v53 = vsel %vm68_vm11, %v1031_v39, %v859_v8  ;;  %v270_v23 = vsel %vm68_vm11, %v860_v7, %v855_v0  ;;  %v206_v25 = vsel %vm68_vm11, %v850_v61, %v854_v11 }
  0xfd   :  { %v863_v24 = vpop.permute.xlu1 %862  ;;  %v873_v12 = vpop.permute.xlu0 %872  ;;  %v343_v15 = vrot.slane %v272_v53, 4  ;;  %v344_v39 = vrot.slane %v269_v48, 4  ;;  %v345_v45 = vrot.slane %v270_v23, 4  ;;  %v334_v37 = vrot.slane %v206_v25, 4 }
  0xfe   :  { %v865_v6 = vunpack.i.h.bf16 %v863_v24  ;;  %v864_v56 = vunpack.i.l.bf16 %v863_v24  ;;  %v875_v44 = vunpack.i.h.bf16 %v873_v12  ;;  %v874_v13 = vunpack.i.l.bf16 %v873_v12 }
 0x100   :  { %v237_v27 = vsel %vm68_vm11, %v864_v56, %v865_v6  ;;  %v242_v28 = vsel %vm68_vm11, %v1006_v22, %v864_v56  ;;  %v301_v20 = vsel %vm68_vm11, %v874_v13, %v875_v44  ;;  %v306_v35 = vsel %vm68_vm11, %v1069_v17, %v874_v13 }
 0x101   :  { %v868_v31 = vpop.permute.xlu1 %867  ;;  %v369_v32 = vsel %vm157_vm0, %v237_v27, %v344_v39  ;;  %v368_v2 = vsel %vm157_vm0, %v242_v28, %v343_v15  ;;  %v384_v41 = vpack.c.bf16 %v301_v20, %v301_v20  ;;  %v383_v52 = vpack.c.bf16 %v306_v35, %v306_v35 }
 0x102   :  { %v870_v36 = vunpack.i.h.bf16 %v868_v31  ;;  %v869_v38 = vunpack.i.l.bf16 %v868_v31  ;;  %v379_v40 = vpack.c.bf16 %v369_v32, %v364_v16  ;;  %v378_v43 = vpack.c.bf16 %v368_v2, %v363_v18 }
 0x103   :  { %v431_v58 = vsel %vm423_vm12, %v383_v52, 0 }
 0x104   :  { %v174_v51 = vsel %vm68_vm11, %v845_v59, %v869_v38  ;;  %v238_v22 = vsel %vm68_vm11, %v865_v6, %v870_v36  ;;  %482 = vmatprep.subr.bf16.mxu1 %v379_v40 }
 0x105   :  { %v300_v54 = vpop.permute.xlu1 %299  ;;  %483 = vmatpush1.bf16.msra.mxu1 %v378_v43  ;;  %v365_v55 = vsel %vm157_vm0, %v174_v51, %v334_v37  ;;  %v370_v57 = vsel %vm157_vm0, %v238_v22, %v345_v45 }
 0x106   :  { %v302_v17 = vsel %vm68_vm11, %v875_v44, %v300_v54  ;;  %677 = vmatprep.subr.msk.bf16.mxu1 %vm423_vm12, %v384_v41  ;;  %v380_v29 = vpack.c.bf16 %v370_v57, %v365_v55 }
 0x107   :  { %v385_v60 = vpack.c.bf16 %v302_v17, %v302_v17 }
 0x108   :  { %697 = vmatpush3.bf16.msra.mxu0 %v380_v29 }
 0x109   :  { %485 = vmatpush1.bf16.msra.mxu1 %v431_v58  ;;  %698 = vmatprep.subr.bf16.mxu0 %v891_v42  ;;  %v437_v46 = vsel %vm423_vm12, %v385_v60, 0  ;;  %v563_v42 = vsub.s32 0, %v1067_v3 }
 0x10a   :  { %v403_v19 = vpop.permute.xlu1 %402 }
 0x10b   :  { %v564_v21 = vrot.slane %v1085_v50, %v563_v42  ;;  %v568_v61 = vrot.slane %v1117_v14, %v563_v42  ;;  %v413_v50 = vsel %vm68_vm11, %v1135_v49, %v403_v19 }
 0x10c   :  { %678 = vmatmul.mubr.msk.bf16.vlgmr.msra.gmra.mrb[0].mxu1 %vm419_vm15, %v1127_v34  ;;  %699 = vmatpush3.bf16.msra.mxu0 %v437_v46  ;;  %v572_v26 = vrot.slane %v413_v50, %v563_v42 }
 0x10e   :  { %v417_v63 = vpop.permute.xlu0 %416 }
 0x10f   :  { %701 = vmatmul.mubr.msk.bf16.vlgmr.msra.gmra.mrb[4].mxu0 %vm419_vm15, %v1127_v34 }
 0x113   :  { %v405_v3 = vpop.permute.xlu1 %404 }
 0x114   :  { %v408_v14 = vsel %vm68_vm11, %v403_v19, %v405_v3 }
 0x115   :  { %v576_v53 = vrot.slane %v408_v14, %v563_v42 }
 0x116   :  { %v407_v8 = vpop.permute.xlu0 %406 }
 0x117   :  { %v409_v9 = vsel %vm68_vm11, %v405_v3, %v407_v8 }
 0x118   :  { %v580_v0 = vrot.slane %v409_v9, %v563_v42 }
 0x17a   :  { %v473_v47 = vpop.f32.mrb[0].mxu0 }
 0x17b   :  { %v475_v34 = vpop.f32.mrb[1].mxu0  ;;  %v474_v59 = vadd.f32 %v473_v47, %v417_v63 }
 0x17c   :  { %v477_v4 = vpop.f32.mrb[2].mxu0  ;;  %v476_v33 = vadd.f32 %v475_v34, %v417_v63 }
 0x17d   :  { %v581_v62 = vmul.f32 %v564_v21, %v474_v59  ;;  %v478_v1 = vpop.f32.mrb[3].mxu0 }
 0x17e   :  { %v582_v5 = vmul.f32 %v568_v61, %v476_v33 }
 0x180   :  { %v686_v7 = vpack.c.bf16 %v582_v5, %v581_v62  ;;  %v586_v44 = vadd.f32 %v582_v5, %v581_v62 }
 0x182   :  { %637 = vst [vmem:[%s1238_s4 + $0x4] sm:$0xff] %v686_v7 }
 0x1df   :  { %v514_v10 = vpop.f32.mrb[0].mxu1 }
 0x1e0   :  { %v515_v30 = vadd.f32 %v514_v10, %v417_v63  ;;  %v516_v48 = vpop.f32.mrb[1].mxu1 }
 0x1e1   :  { %v517_v11 = vadd.f32 %v516_v48, %v417_v63  ;;  %v518_v24 = vpop.f32.mrb[2].mxu1 }
 0x1e2   :  { %v583_v12 = vmul.f32 %v572_v26, %v515_v30  ;;  %v519_v6 = vpop.f32.mrb[3].mxu1  ;;  %v555_v56 = vpop.f32.mrb[4].mxu0 }
 0x1e3   :  { %v584_v13 = vmul.f32 %v576_v53, %v517_v11  ;;  %v556_v15 = vadd.f32 %v555_v56, %v417_v63  ;;  %v702_v39 = vpop.f32.mrb[5].mxu0 }
 0x1e4   :  { %v687_v49 = vpack.c.bf16 %v583_v12, %v583_v12  ;;  %v558_v16 = vpop.f32.mrb[6].mxu0  ;;  %v587_v18 = vadd.f32 %v586_v44, %v583_v12 }
 0x1e5   :  { %v585_v23 = vmul.f32 %v580_v0, %v556_v15  ;;  %v703_v25 = vpop.f32.mrb[7].mxu0  ;;  %v688_v47 = vpack.c.bf16 %v584_v13, %v583_v12 }
 0x1e6   :  { %v588_v27 = vadd.f32 %v587_v18, %v584_v13  ;;  %639 = vst.msk [vmem:[%s1238_s4 + $0xc] sm:$0xf] %vm638_vm3, %v687_v49 }
 0x1e7   :  { %v590_v28 = vsel %vm589_vm4, %v585_v23, 0.0  ;;  %v689_v31 = vpack.c.bf16 %v585_v23, %v585_v23 }
 0x1e8   :  { %v591_v20 = vadd.f32 %v590_v28, %v588_v27 }
 0x1ea   :  { %592 = vadd.xlane.f32.xlu1 %v591_v20 }
 0x1fb   :  { %650 = vrot.lane.b32.xlu1 %v689_v31, %s893_s28 }
 0x277   :  { %v593_v32 = vpop.xlane.xlu1 %592 }
 0x278   :  { %v594_v2 = vmul.f32 0.001953125, %v593_v32  ;;  %617 = vst.msk [vmem:[%s1239_s5] sm:$0xff] %vm136_vm5, %v593_v32 }
 0x27a   :  { %v595_v35 = vsub.f32 %v581_v62, %v594_v2  ;;  %v596_v36 = vsub.f32 %v582_v5, %v594_v2  ;;  %v597_v38 = vsub.f32 %v583_v12, %v594_v2  ;;  %v598_v40 = vsub.f32 %v584_v13, %v594_v2 }
 0x27b   :  { %v651_v43 = vpop.permute.xlu1 %650  ;;  %v599_v45 = vsub.f32 %v585_v23, %v594_v2 }
 0x27c   :  { %685 = vst.msk [vmem:[%s1238_s4 + $0x1c] sm:$0xf] %vm638_vm3, %v651_v43  ;;  %v600_v37 = vmul.f32 %v595_v35, %v564_v21  ;;  %v601_v41 = vmul.f32 %v596_v36, %v568_v61  ;;  %v602_v51 = vmul.f32 %v597_v38, %v572_v26  ;;  %v603_v52 = vmul.f32 %v598_v40, %v576_v53 }
 0x27d   :  { %v604_v22 = vmul.f32 %v599_v45, %v580_v0  ;;  %v653_v61 = vrot.slane %v651_v43, 4 }
 0x27e   :  { %v605_v54 = vmul.f32 %v600_v37, %v600_v37  ;;  %v606_v55 = vmul.f32 %v601_v41, %v601_v41  ;;  %v607_v57 = vmul.f32 %v602_v51, %v602_v51  ;;  %v608_v60 = vmul.f32 %v603_v52, %v603_v52 }
 0x27f   :  { %v609_v29 = vmul.f32 %v604_v22, %v604_v22 }
 0x280   :  { %v610_v17 = vadd.f32 %v606_v55, %v605_v54 }
 0x281   :  { %v613_v42 = vsel %vm589_vm4, %v609_v29, 0.0 }
 0x282   :  { %v611_v58 = vadd.f32 %v610_v17, %v607_v57 }
 0x284   :  { %v612_v46 = vadd.f32 %v611_v58, %v608_v60 }
 0x286   :  { %v614_v63 = vadd.f32 %v613_v42, %v612_v46 }
 0x288   :  { %615 = vadd.xlane.f32.xlu0 %v614_v63 }
 0x29e   :  { %648 = vrot.lane.b32.xlu0 %v688_v47, %s893_s28 }
 0x315   :  { %v616_v34 = vpop.xlane.xlu0 %615 }
 0x316   :  { %618 = vst.msk [vmem:[%s1240_s6] sm:$0xff] %vm136_vm5, %v616_v34 }
 0x319   :  { %v649_v21 = vpop.permute.xlu0 %648 }
 0x31a   :  { %v652_v59 = vrot.slane %v649_v21, 4 }
 0x31c   :  { %v655_v4 = vsel %vm157_vm0, %v652_v59, %v653_v61 }
 0x31d   :  { %v657_v33 = vsel %vm656_vm6, %v649_v21, %v655_v4 }
 0x31e   :  { %684 = vst [vmem:[%s1238_s4 + $0x14] sm:$0xff] %v657_v33 }

</bundles_post_ra>
